<compile_context>
chip_gen: v7x
topology: tpu7x:2x2x1
jax: 0.10.0
libtpu: 0.0.40
codegen_flags: <defaults>
</compile_context>

<pallas_src>
import functools
import math

import jax
import jax.numpy as jnp
from jax.experimental import pallas as pl
from jax.experimental.pallas import tpu as pltpu

# ----- small synthetic MiniLM-style config (real model: 12 layers, H=384) -----
VOCAB      = 100
HIDDEN     = 32
HEADS      = 2
HEAD_DIM   = HIDDEN // HEADS
LAYERS     = 2
INTER      = 64
SEQ        = 8
BATCH      = 2
BATCH_TILE = 2          # per-core batch tile; == BATCH at toy scale (1 tile)
MAX_POS    = 64
LN_EPS     = 1e-12
POS_WEIGHT = 5.6397 * 0.85
NEG_INF    = -1e9

# TODO(synk): do not tune/benchmark at this toy config; measure at H=384 / 12-layer
# shapes where lane dims are 128-aligned and the attention q-axis may need chunking.


# --------------------------- in-kernel helpers ---------------------------
def _layernorm(x2d, gamma, beta):
    mu = jnp.mean(x2d, axis=-1, keepdims=True)
    var = jnp.mean(jnp.square(x2d - mu), axis=-1, keepdims=True)
    return (x2d - mu) * jax.lax.rsqrt(var + LN_EPS) * gamma + beta


def _gelu(x):
    # TODO(synk): HF BERT uses exact erf-GELU; tanh approximation used here
    # (erf is not guaranteed to lower through Mosaic).
    c = math.sqrt(2.0 / math.pi)
    return 0.5 * x * (1.0 + jnp.tanh(c * (x + 0.044715 * x * x * x)))


def _softplus(z):
    return jnp.maximum(z, 0.0) + jnp.log(1.0 + jnp.exp(-jnp.abs(z)))


# ------------------------------ fused kernel ----------------------------------
def fused_forward_kernel(compute_loss,
                         emb_hbm, bias_ref,
                         wqkv_ref, bqkv_ref, wo_ref, bo_ref,
                         ln1g_ref, ln1b_ref,
                         wi_ref, bi_ref, wo2_ref, bo2_ref,
                         ln2g_ref, ln2b_ref,
                         wp_ref, bp_ref, wc_ref, bc_ref,
                         *rest):
    if compute_loss:
        labels_ref, logits_ref, loss_ref, h_scratch, dma_sem = rest
    else:
        logits_ref, h_scratch, dma_sem = rest
        labels_ref = loss_ref = None

    bt = pl.program_id(0)        # batch tile ("parallel")
    layer = pl.program_id(1)     # encoder layer ("arbitrary")

    BT, _, S = bias_ref.shape
    NT, H = h_scratch.shape      # NT == BT * S

    # ---- layer 0: DMA the wrapper-normalized embedding tile into the resident
    # bf16 activation scratch (the full emb block is never kept resident in VMEM).
    @pl.when(layer == 0)
    def _():
        row0 = pl.multiple_of(bt * NT, 8)
        cp = pltpu.make_async_copy(emb_hbm.at[pl.ds(row0, NT)], h_scratch, dma_sem)
        cp.start()
        cp.wait()

    x_b = h_scratch[...]                        # (BT*S, H) bf16 resident activation
    x32 = x_b.astype(jnp.float32)

    # ---- fused QKV projection: ONE K=H, N=3H matmul (1/sqrt(d) folded into W_q) ----
    qkv = jnp.dot(x_b, wqkv_ref[...],
                  preferred_element_type=jnp.float32) + bqkv_ref[...]   # (BT*S, 3H)

    def split_heads(col0):
        # layout-only head split: static lane slices + leading reshape + leading concat
        parts = [qkv[:, col0 + h * HEAD_DIM: col0 + (h + 1) * HEAD_DIM]
                 .reshape(BT, S, HEAD_DIM) for h in range(HEADS)]
        return jnp.concatenate(parts, axis=0)   # (HEADS*BT, S, HEAD_DIM), head-major

    q = split_heads(0)
    k = split_heads(H)
    v = split_heads(2 * H)

    # mask bias broadcast to heads inside the kernel (wrapper ships only (B,1,S))
    bias = jnp.broadcast_to(bias_ref[...][None],
                            (HEADS, BT, 1, S)).reshape(HEADS * BT, 1, S)

    # single head-batched score / context einsums (f32 accumulation)
    s = jnp.einsum('nqd,nkd->nqk', q.astype(jnp.bfloat16), k.astype(jnp.bfloat16),
                   preferred_element_type=jnp.float32)
    s = s + bias
    s = s - jnp.max(s, axis=-1, keepdims=True)
    p = jnp.exp(s)
    p = p * pl.reciprocal(jnp.sum(p, axis=-1, keepdims=True), approx=True)
    ctx = jnp.einsum('nqk,nkd->nqd', p.astype(jnp.bfloat16), v.astype(jnp.bfloat16),
                     preferred_element_type=jnp.float32)    # (HEADS*BT, S, HEAD_DIM)

    # merge heads back onto the lane axis -> ONE K=H output-projection matmul
    ctx2d = jnp.concatenate([ctx[h * BT:(h + 1) * BT] for h in range(HEADS)],
                            axis=-1).reshape(NT, H)
    attn = jnp.dot(ctx2d.astype(jnp.bfloat16), wo_ref[...],
                   preferred_element_type=jnp.float32) + bo_ref[...]
    x1 = _layernorm(x32 + attn, ln1g_ref[...], ln1b_ref[...])

    # feed-forward
    mid = _gelu(jnp.dot(x1.astype(jnp.bfloat16), wi_ref[...],
                        preferred_element_type=jnp.float32) + bi_ref[...])
    ffn = jnp.dot(mid.astype(jnp.bfloat16), wo2_ref[...],
                  preferred_element_type=jnp.float32) + bo2_ref[...]
    y2d = _layernorm(x1 + ffn, ln2g_ref[...], ln2b_ref[...])
    h_scratch[...] = y2d.astype(jnp.bfloat16)

    # ---- last layer: pooler + classifier (+ optional per-example weighted BCE) ----
    @pl.when(layer == pl.num_programs(1) - 1)
    def _():
        cls = y2d.reshape(BT, S, H)[:, 0, :]            # [CLS] rows (leading-only reshape)
        pooled = jnp.tanh(jnp.dot(cls.astype(jnp.bfloat16), wp_ref[...],
                                  preferred_element_type=jnp.float32) + bp_ref[...])
        logits = jnp.dot(pooled.astype(jnp.bfloat16), wc_ref[...],
                         preferred_element_type=jnp.float32) + bc_ref[...]   # (BT, 1)
        logits_ref[...] = logits.astype(logits_ref.dtype)
        if compute_loss:
            # BCEWithLogitsLoss(pos_weight=p): l_i = p*y*softplus(-x) + (1-y)*softplus(x)
            yl = labels_ref[...].astype(jnp.float32)
            loss_ref[...] = (POS_WEIGHT * yl * _softplus(-logits)
                             + (1.0 - yl) * _softplus(logits))


# --------------------------- parameter setup ------------------------------
def init_params(key):
    # TODO(synk): pretrained 'microsoft/MiniLM-L12-H384-uncased' weights are replaced
    # by deterministic synthetic initialization (no checkpoint load).
    scale = 0.02
    keys = iter(jax.random.split(key, 32))
    bf = jnp.bfloat16

    def nrm(shape):
        return scale * jax.random.normal(next(keys), shape, dtype=jnp.float32)

    qk_scale = 1.0 / math.sqrt(HEAD_DIM)
    # fused QKV slab; 1/sqrt(head_dim) folded into the W_q columns (b_q is zero).
    wqkv = jnp.concatenate(
        [nrm((LAYERS, HIDDEN, HIDDEN)) * qk_scale,   # W_q (pre-scaled)
         nrm((LAYERS, HIDDEN, HIDDEN)),              # W_k
         nrm((LAYERS, HIDDEN, HIDDEN))],             # W_v
        axis=-1).astype(bf)

    return {
        'word_emb': nrm((VOCAB, HIDDEN)),
        'pos_emb':  nrm((MAX_POS, HIDDEN)),
        'type_emb': nrm((2, HIDDEN)),
        'emb_ln_g': jnp.ones((1, HIDDEN), jnp.float32),
        'emb_ln_b': jnp.zeros((1, HIDDEN), jnp.float32),
        'wqkv': wqkv,                                            # (L, H, 3H) bf16
        'bqkv': jnp.zeros((LAYERS, 1, 3 * HIDDEN), jnp.float32),
        'wo':   nrm((LAYERS, HIDDEN, HIDDEN)).astype(bf),
        'bo':   jnp.zeros((LAYERS, 1, HIDDEN), jnp.float32),
        'ln1_g': jnp.ones((LAYERS, 1, HIDDEN), jnp.float32),
        'ln1_b': jnp.zeros((LAYERS, 1, HIDDEN), jnp.float32),
        'wi':   nrm((LAYERS, HIDDEN, INTER)).astype(bf),
        'bi':   jnp.zeros((LAYERS, 1, INTER), jnp.float32),
        'wo2':  nrm((LAYERS, INTER, HIDDEN)).astype(bf),
        'bo2':  jnp.zeros((LAYERS, 1, HIDDEN), jnp.float32),
        'ln2_g': jnp.ones((LAYERS, 1, HIDDEN), jnp.float32),
        'ln2_b': jnp.zeros((LAYERS, 1, HIDDEN), jnp.float32),
        'wp': nrm((HIDDEN, HIDDEN)).astype(bf),
        'bp': jnp.zeros((1, HIDDEN), jnp.float32),
        'wc': nrm((HIDDEN, 1)).astype(bf),
        'bc': jnp.zeros((1, 1), jnp.float32),
    }


# ------------------------------ forward -----------------------------------
def _const_spec(shape):
    # Full-array block, same block index for every grid step -> VMEM-resident.
    n = len(shape)
    return pl.BlockSpec(shape, lambda bt, l: (0,) * n)


def _stacked_spec(tail):
    # One per-layer slab per inner ("arbitrary") grid step; Pallas double-buffers it.
    # TODO(synk): on v5e consider pipeline_mode=pl.Buffered(3) for wqkv/wi/wo2 if the
    # per-layer weight DMA is exposed at small B*S.
    n = len(tail)
    return pl.BlockSpec((None,) + tuple(tail), lambda bt, l: (l,) + (0,) * n)


def forward(params, input_ids, attention_mask, labels=None):
    B, S = input_ids.shape
    compute_loss = labels is not None
    BT = BATCH_TILE
    assert B % BT == 0
    n_bt = B // BT

    # ---- embedding gather + LayerNorm (glue; plain JAX, streamed once, not resident) ----
    emb = (params['word_emb'][input_ids]
           + params['pos_emb'][:S][None, :, :]
           + params['type_emb'][0][None, None, :]).astype(jnp.float32)
    mu = jnp.mean(emb, axis=-1, keepdims=True)
    var = jnp.mean(jnp.square(emb - mu), axis=-1, keepdims=True)
    emb0 = ((emb - mu) * jax.lax.rsqrt(var + LN_EPS)
            * params['emb_ln_g'] + params['emb_ln_b'])
    emb0 = emb0.reshape(B * S, HIDDEN).astype(jnp.bfloat16)   # stays in HBM (pl.ANY)

    # attention-mask bias, (B, 1, S); broadcast to heads inside the kernel
    bias = (1.0 - attention_mask.astype(jnp.float32))[:, None, :] * NEG_INF

    in_specs = [
        pl.BlockSpec(memory_space=pl.ANY),                      # emb0: HBM, DMA'd once
        pl.BlockSpec((BT, 1, S), lambda bt, l: (bt, 0, 0)),     # mask bias (per tile)
        _stacked_spec((HIDDEN, 3 * HIDDEN)), _stacked_spec((1, 3 * HIDDEN)),   # wqkv/bqkv
        _stacked_spec((HIDDEN, HIDDEN)), _stacked_spec((1, HIDDEN)),           # wo/bo
        _stacked_spec((1, HIDDEN)), _stacked_spec((1, HIDDEN)),                # ln1 g/b
        _stacked_spec((HIDDEN, INTER)), _stacked_spec((1, INTER)),             # wi/bi
        _stacked_spec((INTER, HIDDEN)), _stacked_spec((1, HIDDEN)),            # wo2/bo2
        _stacked_spec((1, HIDDEN)), _stacked_spec((1, HIDDEN)),                # ln2 g/b
        _const_spec((HIDDEN, HIDDEN)), _const_spec((1, HIDDEN)),               # pooler
        _const_spec((HIDDEN, 1)), _const_spec((1, 1)),                         # classifier
    ]
    inputs = [
        emb0, bias,
        params['wqkv'], params['bqkv'], params['wo'], params['bo'],
        params['ln1_g'], params['ln1_b'], params['wi'], params['bi'],
        params['wo2'], params['bo2'], params['ln2_g'], params['ln2_b'],
        params['wp'], params['bp'], params['wc'], params['bc'],
    ]

    tile_out_spec = pl.BlockSpec((BT, 1), lambda bt, l: (bt, 0))
    if compute_loss:
        in_specs.append(pl.BlockSpec((BT, 1), lambda bt, l: (bt, 0)))
        inputs.append(labels.astype(jnp.float32).reshape(B, 1))
        out_shape = (jax.ShapeDtypeStruct((B, 1), jnp.float32),   # logits
                     jax.ShapeDtypeStruct((B, 1), jnp.float32))   # per-example loss
        out_specs = (tile_out_spec, tile_out_spec)
    else:
        out_shape = jax.ShapeDtypeStruct((B, 1), jnp.float32)
        out_specs = tile_out_spec

    result = pl.pallas_call(
        functools.partial(fused_forward_kernel, compute_loss),
        out_shape=out_shape,
        grid_spec=pltpu.PrefetchScalarGridSpec(
            num_scalar_prefetch=0,
            grid=(n_bt, LAYERS),
            in_specs=in_specs,
            out_specs=out_specs,
            scratch_shapes=[
                pltpu.VMEM((BT * S, HIDDEN), jnp.bfloat16),   # resident bf16 activation
                pltpu.SemaphoreType.DMA,                      # emb -> scratch DMA sem
            ]),
        compiler_params=pltpu.CompilerParams(
            dimension_semantics=("parallel", "arbitrary"),
            # TODO(synk): re-derive this budget at production shapes per chip generation
            # (v7x: 64 MiB physical VMEM; v5e/v6e: 128 MiB).
            vmem_limit_bytes=32 * 1024 * 1024),
    )(*inputs)

    if compute_loss:
        logits, per_ex = result
        return {'loss': jnp.mean(per_ex), 'logits': logits}   # mean reduction in wrapper
    return {'logits': result}


# -------------------------------- main -------------------------------------
if __name__ == "__main__":
    key = jax.random.PRNGKey(0)
    k_ids, _ = jax.random.split(key)

    input_ids = jax.random.randint(k_ids, (BATCH, SEQ), 0, VOCAB, dtype=jnp.int32)
    attention_mask = jnp.ones((BATCH, SEQ), dtype=jnp.int32).at[1, SEQ - 2:].set(0)
    labels = jnp.array([1.0, 0.0], dtype=jnp.float32)

    params = init_params(jax.random.PRNGKey(42))

    out_train = forward(params, input_ids, attention_mask, labels)
    out_train = jax.block_until_ready(out_train)

    out_infer = forward(params, input_ids, attention_mask)
    out_infer = jax.block_until_ready(out_infer)

    assert out_train['logits'].shape == (BATCH, 1)
    assert out_train['loss'].shape == ()
    assert out_infer['logits'].shape == (BATCH, 1)
    assert bool(jnp.isfinite(out_train['loss']))

    print("KERNEL_OK")
</pallas_src>

<mosaic_0001>
module attributes {stable_mosaic.version = 11 : i64} {
  func.func @fused_forward_kernel(%arg0: i32, %arg1: i32, %arg2: memref<16x32xbf16, #tpu.memory_space<any>>, %arg3: memref<2x1x8xf32, #tpu.memory_space<vmem>>, %arg4: memref<1x32x96xbf16, #tpu.memory_space<vmem>>, %arg5: memref<1x1x96xf32, #tpu.memory_space<vmem>>, %arg6: memref<1x32x32xbf16, #tpu.memory_space<vmem>>, %arg7: memref<1x1x32xf32, #tpu.memory_space<vmem>>, %arg8: memref<1x1x32xf32, #tpu.memory_space<vmem>>, %arg9: memref<1x1x32xf32, #tpu.memory_space<vmem>>, %arg10: memref<1x32x64xbf16, #tpu.memory_space<vmem>>, %arg11: memref<1x1x64xf32, #tpu.memory_space<vmem>>, %arg12: memref<1x64x32xbf16, #tpu.memory_space<vmem>>, %arg13: memref<1x1x32xf32, #tpu.memory_space<vmem>>, %arg14: memref<1x1x32xf32, #tpu.memory_space<vmem>>, %arg15: memref<1x1x32xf32, #tpu.memory_space<vmem>>, %arg16: memref<32x32xbf16, #tpu.memory_space<vmem>>, %arg17: memref<1x32xf32, #tpu.memory_space<vmem>>, %arg18: memref<32x1xbf16, #tpu.memory_space<vmem>>, %arg19: memref<1x1xf32, #tpu.memory_space<vmem>>, %arg20: memref<2x1xf32, #tpu.memory_space<vmem>>, %arg21: memref<2x1xf32, #tpu.memory_space<vmem>>, %arg22: memref<2x1xf32, #tpu.memory_space<vmem>>, %arg23: memref<16x32xbf16, #tpu.memory_space<vmem>>, %arg24: memref<!tpu.dma_semaphore, #tpu.memory_space<semaphore_mem>>) attributes {dimension_semantics = [#tpu.dimension_semantics<parallel>, #tpu.dimension_semantics<arbitrary>], iteration_bounds = array<i64: 1, 2>, scalar_prefetch = 0 : i64, scratch_operands = 2 : i64, tpu.core_type = #tpu.core_type<tc>, window_params = [{}, {transform_indices = @transform_1, window_bounds = array<i64: 2, 1, 8>}, {transform_indices = @transform_2, window_bounds = array<i64: 1, 32, 96>}, {transform_indices = @transform_3, window_bounds = array<i64: 1, 1, 96>}, {transform_indices = @transform_4, window_bounds = array<i64: 1, 32, 32>}, {transform_indices = @transform_5, window_bounds = array<i64: 1, 1, 32>}, {transform_indices = @transform_6, window_bounds = array<i64: 1, 1, 32>}, {transform_indices = @transform_7, window_bounds = array<i64: 1, 1, 32>}, {transform_indices = @transform_8, window_bounds = array<i64: 1, 32, 64>}, {transform_indices = @transform_9, window_bounds = array<i64: 1, 1, 64>}, {transform_indices = @transform_10, window_bounds = array<i64: 1, 64, 32>}, {transform_indices = @transform_11, window_bounds = array<i64: 1, 1, 32>}, {transform_indices = @transform_12, window_bounds = array<i64: 1, 1, 32>}, {transform_indices = @transform_13, window_bounds = array<i64: 1, 1, 32>}, {pipeline_mode = #tpu.pipeline_mode<synchronous>, transform_indices = @transform_14, window_bounds = array<i64: 32, 32>}, {pipeline_mode = #tpu.pipeline_mode<synchronous>, transform_indices = @transform_15, window_bounds = array<i64: 1, 32>}, {pipeline_mode = #tpu.pipeline_mode<synchronous>, transform_indices = @transform_16, window_bounds = array<i64: 32, 1>}, {pipeline_mode = #tpu.pipeline_mode<synchronous>, transform_indices = @transform_17, window_bounds = array<i64: 1, 1>}, {transform_indices = @transform_18, window_bounds = array<i64: 2, 1>}, {transform_indices = @transform_19, window_bounds = array<i64: 2, 1>}, {transform_indices = @transform_20, window_bounds = array<i64: 2, 1>}]} {
    %c0_i32 = arith.constant 0 : i32
    %0 = arith.cmpi eq, %arg1, %c0_i32 : i32
    %1 = arith.extui %0 : i1 to i32
    %c0_i32_0 = arith.constant 0 : i32
    %2 = arith.cmpi ne, %1, %c0_i32_0 : i32
    scf.if %2 {
      %c16_i32 = arith.constant 16 : i32
      %150 = arith.muli %arg0, %c16_i32 : i32
      %151 = tpu.assume_multiple %150, 8 : i32
      %c0_i32_65 = arith.constant 0 : i32
      %152 = tpu.memref_slice %arg2[%151, %c0_i32_65] : memref<16x32xbf16, #tpu.memory_space<any>> -> memref<16x32xbf16, #tpu.memory_space<any>>
      tpu.enqueue_dma source(%152 : memref<16x32xbf16, #tpu.memory_space<any>>) target(%arg23 : memref<16x32xbf16, #tpu.memory_space<vmem>>) target_semaphore(%arg24 : memref<!tpu.dma_semaphore, #tpu.memory_space<semaphore_mem>>)
      %c0_i32_66 = arith.constant 0 : i32
      %153 = tpu.memref_slice %arg2[%151, %c0_i32_66] : memref<16x32xbf16, #tpu.memory_space<any>> -> memref<16x32xbf16, #tpu.memory_space<any>>
      tpu.wait_dma2 semaphore(%arg24 : memref<!tpu.dma_semaphore, #tpu.memory_space<semaphore_mem>>) src(%153 : memref<16x32xbf16, #tpu.memory_space<any>>) dst(%arg23 : memref<16x32xbf16, #tpu.memory_space<vmem>>)
    } else {
    }
    %c0 = arith.constant 0 : index
    %c0_1 = arith.constant 0 : index
    %3 = vector.load %arg23[%c0, %c0_1] : memref<16x32xbf16, #tpu.memory_space<vmem>>, vector<16x32xbf16>
    %4 = arith.extf %3 : vector<16x32xbf16> to vector<16x32xf32>
    %c0_2 = arith.constant 0 : index
    %c0_3 = arith.constant 0 : index
    %c0_4 = arith.constant 0 : index
    %5 = vector.load %arg4[%c0_2, %c0_3, %c0_4] : memref<1x32x96xbf16, #tpu.memory_space<vmem>>, vector<1x32x96xbf16>
    %6 = vector.shape_cast %5 : vector<1x32x96xbf16> to vector<32x96xbf16>
    %cst = arith.constant dense<0.000000e+00> : vector<16x96xf32>
    %7 = tpu.matmul %3, %6, %cst {dimension_numbers = #tpu.dot_dimension_numbers<[1], [0], [0], [1], [0, 0, 1, 1], [], []>} : vector<16x32xbf16>, vector<32x96xbf16>, vector<16x96xf32> -> vector<16x96xf32>
    %c0_5 = arith.constant 0 : index
    %c0_6 = arith.constant 0 : index
    %c0_7 = arith.constant 0 : index
    %8 = vector.load %arg5[%c0_5, %c0_6, %c0_7] : memref<1x1x96xf32, #tpu.memory_space<vmem>>, vector<1x1x96xf32>
    %9 = vector.shape_cast %8 : vector<1x1x96xf32> to vector<1x96xf32>
    %10 = vector.broadcast %9 : vector<1x96xf32> to vector<16x96xf32>
    %11 = arith.addf %7, %10 : vector<16x96xf32>
    %12 = vector.extract_strided_slice %11 {offsets = [0, 0], sizes = [16, 16], strides = [1, 1]} : vector<16x96xf32> to vector<16x16xf32>
    %13 = vector.shape_cast %12 : vector<16x16xf32> to vector<2x8x16xf32>
    %14 = vector.extract_strided_slice %11 {offsets = [0, 16], sizes = [16, 16], strides = [1, 1]} : vector<16x96xf32> to vector<16x16xf32>
    %15 = vector.shape_cast %14 : vector<16x16xf32> to vector<2x8x16xf32>
    %16 = tpu.concatenate %13, %15 in 0 : vector<2x8x16xf32>, vector<2x8x16xf32> -> vector<4x8x16xf32>
    %17 = vector.extract_strided_slice %11 {offsets = [0, 32], sizes = [16, 16], strides = [1, 1]} : vector<16x96xf32> to vector<16x16xf32>
    %18 = vector.shape_cast %17 : vector<16x16xf32> to vector<2x8x16xf32>
    %19 = vector.extract_strided_slice %11 {offsets = [0, 48], sizes = [16, 16], strides = [1, 1]} : vector<16x96xf32> to vector<16x16xf32>
    %20 = vector.shape_cast %19 : vector<16x16xf32> to vector<2x8x16xf32>
    %21 = tpu.concatenate %18, %20 in 0 : vector<2x8x16xf32>, vector<2x8x16xf32> -> vector<4x8x16xf32>
    %22 = vector.extract_strided_slice %11 {offsets = [0, 64], sizes = [16, 16], strides = [1, 1]} : vector<16x96xf32> to vector<16x16xf32>
    %23 = vector.shape_cast %22 : vector<16x16xf32> to vector<2x8x16xf32>
    %24 = vector.extract_strided_slice %11 {offsets = [0, 80], sizes = [16, 16], strides = [1, 1]} : vector<16x96xf32> to vector<16x16xf32>
    %25 = vector.shape_cast %24 : vector<16x16xf32> to vector<2x8x16xf32>
    %26 = tpu.concatenate %23, %25 in 0 : vector<2x8x16xf32>, vector<2x8x16xf32> -> vector<4x8x16xf32>
    %c0_8 = arith.constant 0 : index
    %c0_9 = arith.constant 0 : index
    %c0_10 = arith.constant 0 : index
    %27 = vector.load %arg3[%c0_8, %c0_9, %c0_10] : memref<2x1x8xf32, #tpu.memory_space<vmem>>, vector<2x1x8xf32>
    %28 = vector.shape_cast %27 : vector<2x1x8xf32> to vector<1x2x1x8xf32>
    %29 = vector.shape_cast %28 : vector<1x2x1x8xf32> to vector<1x2x1x8xf32>
    %30 = vector.broadcast %29 : vector<1x2x1x8xf32> to vector<2x2x1x8xf32>
    %31 = vector.shape_cast %30 : vector<2x2x1x8xf32> to vector<4x1x8xf32>
    %32 = arith.truncf %16 : vector<4x8x16xf32> to vector<4x8x16xbf16>
    %33 = arith.truncf %21 : vector<4x8x16xf32> to vector<4x8x16xbf16>
    "tpu.trace_start"() <{level = 10 : i32, message = "nqd,nkd->nqk"}> : () -> ()
    %cst_11 = arith.constant dense<0.000000e+00> : vector<4x8x8xf32>
    %34 = tpu.matmul %32, %33, %cst_11 {dimension_numbers = #tpu.dot_dimension_numbers<[2], [2], [1], [1], [0, 0, 0, 1, 1, 1], [0], [0]>} : vector<4x8x16xbf16>, vector<4x8x16xbf16>, vector<4x8x8xf32> -> vector<4x8x8xf32>
    "tpu.trace_stop"() : () -> ()
    %35 = vector.broadcast %31 : vector<4x1x8xf32> to vector<4x8x8xf32>
    %36 = arith.addf %34, %35 : vector<4x8x8xf32>
    %cst_12 = arith.constant dense<0xFF800000> : vector<4x8xf32>
    %37 = vector.multi_reduction <maximumf>, %36, %cst_12 [2] : vector<4x8x8xf32> to vector<4x8xf32>
    %38 = vector.shape_cast %37 : vector<4x8xf32> to vector<4x8x1xf32>
    %39 = vector.broadcast %38 : vector<4x8x1xf32> to vector<4x8x8xf32>
    %40 = arith.subf %36, %39 : vector<4x8x8xf32>
    %41 = math.exp %40 : vector<4x8x8xf32>
    %cst_13 = arith.constant dense<0.000000e+00> : vector<4x8xf32>
    %42 = vector.multi_reduction <add>, %41, %cst_13 [2] : vector<4x8x8xf32> to vector<4x8xf32>
    %43 = vector.shape_cast %42 : vector<4x8xf32> to vector<4x8x1xf32>
    %44 = tpu.reciprocal %43 {approx = true} : vector<4x8x1xf32> -> vector<4x8x1xf32>
    %45 = vector.broadcast %44 : vector<4x8x1xf32> to vector<4x8x8xf32>
    %46 = arith.mulf %41, %45 : vector<4x8x8xf32>
    %47 = arith.truncf %46 : vector<4x8x8xf32> to vector<4x8x8xbf16>
    %48 = arith.truncf %26 : vector<4x8x16xf32> to vector<4x8x16xbf16>
    "tpu.trace_start"() <{level = 10 : i32, message = "nqk,nkd->nqd"}> : () -> ()
    %cst_14 = arith.constant dense<0.000000e+00> : vector<4x8x16xf32>
    %49 = tpu.matmul %47, %48, %cst_14 {dimension_numbers = #tpu.dot_dimension_numbers<[2], [1], [1], [2], [0, 0, 0, 1, 1, 2], [0], [0]>} : vector<4x8x8xbf16>, vector<4x8x16xbf16>, vector<4x8x16xf32> -> vector<4x8x16xf32>
    "tpu.trace_stop"() : () -> ()
    %50 = vector.extract_strided_slice %49 {offsets = [0, 0, 0], sizes = [2, 8, 16], strides = [1, 1, 1]} : vector<4x8x16xf32> to vector<2x8x16xf32>
    %51 = vector.extract_strided_slice %49 {offsets = [2, 0, 0], sizes = [2, 8, 16], strides = [1, 1, 1]} : vector<4x8x16xf32> to vector<2x8x16xf32>
    %52 = tpu.concatenate %50, %51 in 2 : vector<2x8x16xf32>, vector<2x8x16xf32> -> vector<2x8x32xf32>
    %53 = vector.shape_cast %52 : vector<2x8x32xf32> to vector<16x32xf32>
    %54 = arith.truncf %53 : vector<16x32xf32> to vector<16x32xbf16>
    %c0_15 = arith.constant 0 : index
    %c0_16 = arith.constant 0 : index
    %c0_17 = arith.constant 0 : index
    %55 = vector.load %arg6[%c0_15, %c0_16, %c0_17] : memref<1x32x32xbf16, #tpu.memory_space<vmem>>, vector<1x32x32xbf16>
    %56 = vector.shape_cast %55 : vector<1x32x32xbf16> to vector<32x32xbf16>
    %cst_18 = arith.constant dense<0.000000e+00> : vector<16x32xf32>
    %57 = tpu.matmul %54, %56, %cst_18 {dimension_numbers = #tpu.dot_dimension_numbers<[1], [0], [0], [1], [0, 0, 1, 1], [], []>} : vector<16x32xbf16>, vector<32x32xbf16>, vector<16x32xf32> -> vector<16x32xf32>
    %c0_19 = arith.constant 0 : index
    %c0_20 = arith.constant 0 : index
    %c0_21 = arith.constant 0 : index
    %58 = vector.load %arg7[%c0_19, %c0_20, %c0_21] : memref<1x1x32xf32, #tpu.memory_space<vmem>>, vector<1x1x32xf32>
    %59 = vector.shape_cast %58 : vector<1x1x32xf32> to vector<1x32xf32>
    %60 = vector.broadcast %59 : vector<1x32xf32> to vector<16x32xf32>
    %61 = arith.addf %57, %60 : vector<16x32xf32>
    %62 = arith.addf %4, %61 : vector<16x32xf32>
    %c0_22 = arith.constant 0 : index
    %c0_23 = arith.constant 0 : index
    %c0_24 = arith.constant 0 : index
    %63 = vector.load %arg8[%c0_22, %c0_23, %c0_24] : memref<1x1x32xf32, #tpu.memory_space<vmem>>, vector<1x1x32xf32>
    %64 = vector.shape_cast %63 : vector<1x1x32xf32> to vector<1x32xf32>
    %c0_25 = arith.constant 0 : index
    %c0_26 = arith.constant 0 : index
    %c0_27 = arith.constant 0 : index
    %65 = vector.load %arg9[%c0_25, %c0_26, %c0_27] : memref<1x1x32xf32, #tpu.memory_space<vmem>>, vector<1x1x32xf32>
    %66 = vector.shape_cast %65 : vector<1x1x32xf32> to vector<1x32xf32>
    %cst_28 = arith.constant dense<0.000000e+00> : vector<16xf32>
    %67 = vector.multi_reduction <add>, %62, %cst_28 [1] : vector<16x32xf32> to vector<16xf32>
    %68 = vector.shape_cast %67 : vector<16xf32> to vector<16x1xf32>
    %cst_29 = arith.constant 3.200000e+01 : f32
    %69 = vector.broadcast %cst_29 : f32 to vector<16x1xf32>
    %70 = arith.divf %68, %69 : vector<16x1xf32>
    %71 = vector.broadcast %70 : vector<16x1xf32> to vector<16x32xf32>
    %72 = arith.subf %62, %71 : vector<16x32xf32>
    %73 = arith.mulf %72, %72 : vector<16x32xf32>
    %cst_30 = arith.constant dense<0.000000e+00> : vector<16xf32>
    %74 = vector.multi_reduction <add>, %73, %cst_30 [1] : vector<16x32xf32> to vector<16xf32>
    %75 = vector.shape_cast %74 : vector<16xf32> to vector<16x1xf32>
    %cst_31 = arith.constant 3.200000e+01 : f32
    %76 = vector.broadcast %cst_31 : f32 to vector<16x1xf32>
    %77 = arith.divf %75, %76 : vector<16x1xf32>
    %78 = vector.broadcast %70 : vector<16x1xf32> to vector<16x32xf32>
    %79 = arith.subf %62, %78 : vector<16x32xf32>
    %cst_32 = arith.constant 9.99999996E-13 : f32
    %80 = vector.broadcast %cst_32 : f32 to vector<16x1xf32>
    %81 = arith.addf %77, %80 : vector<16x1xf32>
    %82 = math.rsqrt %81 : vector<16x1xf32>
    %83 = vector.broadcast %82 : vector<16x1xf32> to vector<16x32xf32>
    %84 = arith.mulf %79, %83 : vector<16x32xf32>
    %85 = vector.broadcast %64 : vector<1x32xf32> to vector<16x32xf32>
    %86 = arith.mulf %84, %85 : vector<16x32xf32>
    %87 = vector.broadcast %66 : vector<1x32xf32> to vector<16x32xf32>
    %88 = arith.addf %86, %87 : vector<16x32xf32>
    %89 = arith.truncf %88 : vector<16x32xf32> to vector<16x32xbf16>
    %c0_33 = arith.constant 0 : index
    %c0_34 = arith.constant 0 : index
    %c0_35 = arith.constant 0 : index
    %90 = vector.load %arg10[%c0_33, %c0_34, %c0_35] : memref<1x32x64xbf16, #tpu.memory_space<vmem>>, vector<1x32x64xbf16>
    %91 = vector.shape_cast %90 : vector<1x32x64xbf16> to vector<32x64xbf16>
    %cst_36 = arith.constant dense<0.000000e+00> : vector<16x64xf32>
    %92 = tpu.matmul %89, %91, %cst_36 {dimension_numbers = #tpu.dot_dimension_numbers<[1], [0], [0], [1], [0, 0, 1, 1], [], []>} : vector<16x32xbf16>, vector<32x64xbf16>, vector<16x64xf32> -> vector<16x64xf32>
    %c0_37 = arith.constant 0 : index
    %c0_38 = arith.constant 0 : index
    %c0_39 = arith.constant 0 : index
    %93 = vector.load %arg11[%c0_37, %c0_38, %c0_39] : memref<1x1x64xf32, #tpu.memory_space<vmem>>, vector<1x1x64xf32>
    %94 = vector.shape_cast %93 : vector<1x1x64xf32> to vector<1x64xf32>
    %95 = vector.broadcast %94 : vector<1x64xf32> to vector<16x64xf32>
    %96 = arith.addf %92, %95 : vector<16x64xf32>
    %cst_40 = arith.constant 5.000000e-01 : f32
    %97 = vector.broadcast %cst_40 : f32 to vector<16x64xf32>
    %98 = arith.mulf %97, %96 : vector<16x64xf32>
    %cst_41 = arith.constant 4.471500e-02 : f32
    %99 = vector.broadcast %cst_41 : f32 to vector<16x64xf32>
    %100 = arith.mulf %99, %96 : vector<16x64xf32>
    %101 = arith.mulf %100, %96 : vector<16x64xf32>
    %102 = arith.mulf %101, %96 : vector<16x64xf32>
    %103 = arith.addf %96, %102 : vector<16x64xf32>
    %cst_42 = arith.constant 0.797884583 : f32
    %104 = vector.broadcast %cst_42 : f32 to vector<16x64xf32>
    %105 = arith.mulf %104, %103 : vector<16x64xf32>
    %106 = math.tanh %105 : vector<16x64xf32>
    %cst_43 = arith.constant 1.000000e+00 : f32
    %107 = vector.broadcast %cst_43 : f32 to vector<16x64xf32>
    %108 = arith.addf %107, %106 : vector<16x64xf32>
    %109 = arith.mulf %98, %108 : vector<16x64xf32>
    %110 = arith.truncf %109 : vector<16x64xf32> to vector<16x64xbf16>
    %c0_44 = arith.constant 0 : index
    %c0_45 = arith.constant 0 : index
    %c0_46 = arith.constant 0 : index
    %111 = vector.load %arg12[%c0_44, %c0_45, %c0_46] : memref<1x64x32xbf16, #tpu.memory_space<vmem>>, vector<1x64x32xbf16>
    %112 = vector.shape_cast %111 : vector<1x64x32xbf16> to vector<64x32xbf16>
    %cst_47 = arith.constant dense<0.000000e+00> : vector<16x32xf32>
    %113 = tpu.matmul %110, %112, %cst_47 {dimension_numbers = #tpu.dot_dimension_numbers<[1], [0], [0], [1], [0, 0, 1, 1], [], []>} : vector<16x64xbf16>, vector<64x32xbf16>, vector<16x32xf32> -> vector<16x32xf32>
    %c0_48 = arith.constant 0 : index
    %c0_49 = arith.constant 0 : index
    %c0_50 = arith.constant 0 : index
    %114 = vector.load %arg13[%c0_48, %c0_49, %c0_50] : memref<1x1x32xf32, #tpu.memory_space<vmem>>, vector<1x1x32xf32>
    %115 = vector.shape_cast %114 : vector<1x1x32xf32> to vector<1x32xf32>
    %116 = vector.broadcast %115 : vector<1x32xf32> to vector<16x32xf32>
    %117 = arith.addf %113, %116 : vector<16x32xf32>
    %118 = arith.addf %88, %117 : vector<16x32xf32>
    %c0_51 = arith.constant 0 : index
    %c0_52 = arith.constant 0 : index
    %c0_53 = arith.constant 0 : index
    %119 = vector.load %arg14[%c0_51, %c0_52, %c0_53] : memref<1x1x32xf32, #tpu.memory_space<vmem>>, vector<1x1x32xf32>
    %120 = vector.shape_cast %119 : vector<1x1x32xf32> to vector<1x32xf32>
    %c0_54 = arith.constant 0 : index
    %c0_55 = arith.constant 0 : index
    %c0_56 = arith.constant 0 : index
    %121 = vector.load %arg15[%c0_54, %c0_55, %c0_56] : memref<1x1x32xf32, #tpu.memory_space<vmem>>, vector<1x1x32xf32>
    %122 = vector.shape_cast %121 : vector<1x1x32xf32> to vector<1x32xf32>
    %cst_57 = arith.constant dense<0.000000e+00> : vector<16xf32>
    %123 = vector.multi_reduction <add>, %118, %cst_57 [1] : vector<16x32xf32> to vector<16xf32>
    %124 = vector.shape_cast %123 : vector<16xf32> to vector<16x1xf32>
    %cst_58 = arith.constant 3.200000e+01 : f32
    %125 = vector.broadcast %cst_58 : f32 to vector<16x1xf32>
    %126 = arith.divf %124, %125 : vector<16x1xf32>
    %127 = vector.broadcast %126 : vector<16x1xf32> to vector<16x32xf32>
    %128 = arith.subf %118, %127 : vector<16x32xf32>
    %129 = arith.mulf %128, %128 : vector<16x32xf32>
    %cst_59 = arith.constant dense<0.000000e+00> : vector<16xf32>
    %130 = vector.multi_reduction <add>, %129, %cst_59 [1] : vector<16x32xf32> to vector<16xf32>
    %131 = vector.shape_cast %130 : vector<16xf32> to vector<16x1xf32>
    %cst_60 = arith.constant 3.200000e+01 : f32
    %132 = vector.broadcast %cst_60 : f32 to vector<16x1xf32>
    %133 = arith.divf %131, %132 : vector<16x1xf32>
    %134 = vector.broadcast %126 : vector<16x1xf32> to vector<16x32xf32>
    %135 = arith.subf %118, %134 : vector<16x32xf32>
    %cst_61 = arith.constant 9.99999996E-13 : f32
    %136 = vector.broadcast %cst_61 : f32 to vector<16x1xf32>
    %137 = arith.addf %133, %136 : vector<16x1xf32>
    %138 = math.rsqrt %137 : vector<16x1xf32>
    %139 = vector.broadcast %138 : vector<16x1xf32> to vector<16x32xf32>
    %140 = arith.mulf %135, %139 : vector<16x32xf32>
    %141 = vector.broadcast %120 : vector<1x32xf32> to vector<16x32xf32>
    %142 = arith.mulf %140, %141 : vector<16x32xf32>
    %143 = vector.broadcast %122 : vector<1x32xf32> to vector<16x32xf32>
    %144 = arith.addf %142, %143 : vector<16x32xf32>
    %145 = arith.truncf %144 : vector<16x32xf32> to vector<16x32xbf16>
    %c0_62 = arith.constant 0 : index
    %c0_63 = arith.constant 0 : index
    %146 = vector.load %arg23[%c0_62, %c0_63] : memref<16x32xbf16, #tpu.memory_space<vmem>>, vector<16x32xbf16>
    tpu.vector_store %arg23[%c0_62, %c0_63], %145 {strides = array<i32>} : memref<16x32xbf16, #tpu.memory_space<vmem>>, vector<16x32xbf16>,
    %c1_i32 = arith.constant 1 : i32
    %147 = arith.cmpi eq, %arg1, %c1_i32 : i32
    %148 = arith.extui %147 : i1 to i32
    %c0_i32_64 = arith.constant 0 : i32
    %149 = arith.cmpi ne, %148, %c0_i32_64 : i32
    scf.if %149 {
      %150 = vector.shape_cast %144 : vector<16x32xf32> to vector<2x8x32xf32>
      %151 = vector.extract_strided_slice %150 {offsets = [0, 0, 0], sizes = [2, 1, 32], strides = [1, 1, 1]} : vector<2x8x32xf32> to vector<2x1x32xf32>
      %152 = vector.shape_cast %151 : vector<2x1x32xf32> to vector<2x32xf32>
      %153 = arith.truncf %152 : vector<2x32xf32> to vector<2x32xbf16>
      %c0_65 = arith.constant 0 : index
      %c0_66 = arith.constant 0 : index
      %154 = vector.load %arg16[%c0_65, %c0_66] : memref<32x32xbf16, #tpu.memory_space<vmem>>, vector<32x32xbf16>
      %cst_67 = arith.constant dense<0.000000e+00> : vector<2x32xf32>
      %155 = tpu.matmul %153, %154, %cst_67 {dimension_numbers = #tpu.dot_dimension_numbers<[1], [0], [0], [1], [0, 0, 1, 1], [], []>} : vector<2x32xbf16>, vector<32x32xbf16>, vector<2x32xf32> -> vector<2x32xf32>
      %c0_68 = arith.constant 0 : index
      %c0_69 = arith.constant 0 : index
      %156 = vector.load %arg17[%c0_68, %c0_69] : memref<1x32xf32, #tpu.memory_space<vmem>>, vector<1x32xf32>
      %157 = vector.broadcast %156 : vector<1x32xf32> to vector<2x32xf32>
      %158 = arith.addf %155, %157 : vector<2x32xf32>
      %159 = math.tanh %158 : vector<2x32xf32>
      %160 = arith.truncf %159 : vector<2x32xf32> to vector<2x32xbf16>
      %c0_70 = arith.constant 0 : index
      %c0_71 = arith.constant 0 : index
      %161 = vector.load %arg18[%c0_70, %c0_71] : memref<32x1xbf16, #tpu.memory_space<vmem>>, vector<32x1xbf16>
      %cst_72 = arith.constant dense<0.000000e+00> : vector<2x1xf32>
      %162 = tpu.matmul %160, %161, %cst_72 {dimension_numbers = #tpu.dot_dimension_numbers<[1], [0], [0], [1], [0, 0, 1, 1], [], []>} : vector<2x32xbf16>, vector<32x1xbf16>, vector<2x1xf32> -> vector<2x1xf32>
      %c0_73 = arith.constant 0 : index
      %c0_74 = arith.constant 0 : index
      %163 = vector.load %arg19[%c0_73, %c0_74] : memref<1x1xf32, #tpu.memory_space<vmem>>, vector<1x1xf32>
      %164 = vector.broadcast %163 : vector<1x1xf32> to vector<2x1xf32>
      %165 = arith.addf %162, %164 : vector<2x1xf32>
      %c0_75 = arith.constant 0 : index
      %c0_76 = arith.constant 0 : index
      %166 = vector.load %arg21[%c0_75, %c0_76] : memref<2x1xf32, #tpu.memory_space<vmem>>, vector<2x1xf32>
      tpu.vector_store %arg21[%c0_75, %c0_76], %165 {strides = array<i32>} : memref<2x1xf32, #tpu.memory_space<vmem>>, vector<2x1xf32>,
      %c0_77 = arith.constant 0 : index
      %c0_78 = arith.constant 0 : index
      %167 = vector.load %arg20[%c0_77, %c0_78] : memref<2x1xf32, #tpu.memory_space<vmem>>, vector<2x1xf32>
      %cst_79 = arith.constant 4.79374504 : f32
      %168 = vector.broadcast %cst_79 : f32 to vector<2x1xf32>
      %169 = arith.mulf %168, %167 : vector<2x1xf32>
      %cst_80 = arith.constant 0.000000e+00 : f32
      %170 = vector.broadcast %cst_80 : f32 to vector<2x1xf32>
      %171 = arith.subf %170, %165 : vector<2x1xf32>
      %cst_81 = arith.constant 0.000000e+00 : f32
      %172 = vector.broadcast %cst_81 : f32 to vector<2x1xf32>
      %173 = arith.maximumf %171, %172 : vector<2x1xf32>
      %174 = math.absf %171 : vector<2x1xf32>
      %cst_82 = arith.constant 0.000000e+00 : f32
      %175 = vector.broadcast %cst_82 : f32 to vector<2x1xf32>
      %176 = arith.subf %175, %174 : vector<2x1xf32>
      %177 = math.exp %176 : vector<2x1xf32>
      %cst_83 = arith.constant 1.000000e+00 : f32
      %178 = vector.broadcast %cst_83 : f32 to vector<2x1xf32>
      %179 = arith.addf %178, %177 : vector<2x1xf32>
      %180 = math.log %179 : vector<2x1xf32>
      %181 = arith.addf %173, %180 : vector<2x1xf32>
      %182 = arith.mulf %169, %181 : vector<2x1xf32>
      %cst_84 = arith.constant 1.000000e+00 : f32
      %183 = vector.broadcast %cst_84 : f32 to vector<2x1xf32>
      %184 = arith.subf %183, %167 : vector<2x1xf32>
      %cst_85 = arith.constant 0.000000e+00 : f32
      %185 = vector.broadcast %cst_85 : f32 to vector<2x1xf32>
      %186 = arith.maximumf %165, %185 : vector<2x1xf32>
      %187 = math.absf %165 : vector<2x1xf32>
      %cst_86 = arith.constant 0.000000e+00 : f32
      %188 = vector.broadcast %cst_86 : f32 to vector<2x1xf32>
      %189 = arith.subf %188, %187 : vector<2x1xf32>
      %190 = math.exp %189 : vector<2x1xf32>
      %cst_87 = arith.constant 1.000000e+00 : f32
      %191 = vector.broadcast %cst_87 : f32 to vector<2x1xf32>
      %192 = arith.addf %191, %190 : vector<2x1xf32>
      %193 = math.log %192 : vector<2x1xf32>
      %194 = arith.addf %186, %193 : vector<2x1xf32>
      %195 = arith.mulf %184, %194 : vector<2x1xf32>
      %196 = arith.addf %182, %195 : vector<2x1xf32>
      %c0_88 = arith.constant 0 : index
      %c0_89 = arith.constant 0 : index
      %197 = vector.load %arg22[%c0_88, %c0_89] : memref<2x1xf32, #tpu.memory_space<vmem>>, vector<2x1xf32>
      tpu.vector_store %arg22[%c0_88, %c0_89], %196 {strides = array<i32>} : memref<2x1xf32, #tpu.memory_space<vmem>>, vector<2x1xf32>,
    } else {
    }
    return
  }
  func.func @transform_1(%arg0: i32, %arg1: i32) -> (i32, i32, i32) {
    %c0_i32 = arith.constant 0 : i32
    %c0_i32_0 = arith.constant 0 : i32
    %c0_i32_1 = arith.constant 0 : i32
    return %arg0, %c0_i32, %c0_i32_0 : i32, i32, i32
  }
  func.func @transform_2(%arg0: i32, %arg1: i32) -> (i32, i32, i32) {
    %c0_i32 = arith.constant 0 : i32
    %c0_i32_0 = arith.constant 0 : i32
    %c0_i32_1 = arith.constant 0 : i32
    return %arg1, %c0_i32, %c0_i32_0 : i32, i32, i32
  }
  func.func @transform_3(%arg0: i32, %arg1: i32) -> (i32, i32, i32) {
    %c0_i32 = arith.constant 0 : i32
    %c0_i32_0 = arith.constant 0 : i32
    %c0_i32_1 = arith.constant 0 : i32
    return %arg1, %c0_i32, %c0_i32_0 : i32, i32, i32
  }
  func.func @transform_4(%arg0: i32, %arg1: i32) -> (i32, i32, i32) {
    %c0_i32 = arith.constant 0 : i32
    %c0_i32_0 = arith.constant 0 : i32
    %c0_i32_1 = arith.constant 0 : i32
    return %arg1, %c0_i32, %c0_i32_0 : i32, i32, i32
  }
  func.func @transform_5(%arg0: i32, %arg1: i32) -> (i32, i32, i32) {
    %c0_i32 = arith.constant 0 : i32
    %c0_i32_0 = arith.constant 0 : i32
    %c0_i32_1 = arith.constant 0 : i32
    return %arg1, %c0_i32, %c0_i32_0 : i32, i32, i32
  }
  func.func @transform_6(%arg0: i32, %arg1: i32) -> (i32, i32, i32) {
    %c0_i32 = arith.constant 0 : i32
    %c0_i32_0 = arith.constant 0 : i32
    %c0_i32_1 = arith.constant 0 : i32
    return %arg1, %c0_i32, %c0_i32_0 : i32, i32, i32
  }
  func.func @transform_7(%arg0: i32, %arg1: i32) -> (i32, i32, i32) {
    %c0_i32 = arith.constant 0 : i32
    %c0_i32_0 = arith.constant 0 : i32
    %c0_i32_1 = arith.constant 0 : i32
    return %arg1, %c0_i32, %c0_i32_0 : i32, i32, i32
  }
  func.func @transform_8(%arg0: i32, %arg1: i32) -> (i32, i32, i32) {
    %c0_i32 = arith.constant 0 : i32
    %c0_i32_0 = arith.constant 0 : i32
    %c0_i32_1 = arith.constant 0 : i32
    return %arg1, %c0_i32, %c0_i32_0 : i32, i32, i32
  }
  func.func @transform_9(%arg0: i32, %arg1: i32) -> (i32, i32, i32) {
    %c0_i32 = arith.constant 0 : i32
    %c0_i32_0 = arith.constant 0 : i32
    %c0_i32_1 = arith.constant 0 : i32
    return %arg1, %c0_i32, %c0_i32_0 : i32, i32, i32
  }
  func.func @transform_10(%arg0: i32, %arg1: i32) -> (i32, i32, i32) {
    %c0_i32 = arith.constant 0 : i32
    %c0_i32_0 = arith.constant 0 : i32
    %c0_i32_1 = arith.constant 0 : i32
    return %arg1, %c0_i32, %c0_i32_0 : i32, i32, i32
  }
  func.func @transform_11(%arg0: i32, %arg1: i32) -> (i32, i32, i32) {
    %c0_i32 = arith.constant 0 : i32
    %c0_i32_0 = arith.constant 0 : i32
    %c0_i32_1 = arith.constant 0 : i32
    return %arg1, %c0_i32, %c0_i32_0 : i32, i32, i32
  }
  func.func @transform_12(%arg0: i32, %arg1: i32) -> (i32, i32, i32) {
    %c0_i32 = arith.constant 0 : i32
    %c0_i32_0 = arith.constant 0 : i32
    %c0_i32_1 = arith.constant 0 : i32
    return %arg1, %c0_i32, %c0_i32_0 : i32, i32, i32
  }
  func.func @transform_13(%arg0: i32, %arg1: i32) -> (i32, i32, i32) {
    %c0_i32 = arith.constant 0 : i32
    %c0_i32_0 = arith.constant 0 : i32
    %c0_i32_1 = arith.constant 0 : i32
    return %arg1, %c0_i32, %c0_i32_0 : i32, i32, i32
  }
  func.func @transform_14(%arg0: i32, %arg1: i32) -> (i32, i32) {
    %c0_i32 = arith.constant 0 : i32
    %c0_i32_0 = arith.constant 0 : i32
    %c0_i32_1 = arith.constant 0 : i32
    return %c0_i32, %c0_i32_0 : i32, i32
  }
  func.func @transform_15(%arg0: i32, %arg1: i32) -> (i32, i32) {
    %c0_i32 = arith.constant 0 : i32
    %c0_i32_0 = arith.constant 0 : i32
    %c0_i32_1 = arith.constant 0 : i32
    return %c0_i32, %c0_i32_0 : i32, i32
  }
  func.func @transform_16(%arg0: i32, %arg1: i32) -> (i32, i32) {
    %c0_i32 = arith.constant 0 : i32
    %c0_i32_0 = arith.constant 0 : i32
    %c0_i32_1 = arith.constant 0 : i32
    return %c0_i32, %c0_i32_0 : i32, i32
  }
  func.func @transform_17(%arg0: i32, %arg1: i32) -> (i32, i32) {
    %c0_i32 = arith.constant 0 : i32
    %c0_i32_0 = arith.constant 0 : i32
    %c0_i32_1 = arith.constant 0 : i32
    return %c0_i32, %c0_i32_0 : i32, i32
  }
  func.func @transform_18(%arg0: i32, %arg1: i32) -> (i32, i32) {
    %c0_i32 = arith.constant 0 : i32
    %c0_i32_0 = arith.constant 0 : i32
    return %arg0, %c0_i32 : i32, i32
  }
  func.func @transform_19(%arg0: i32, %arg1: i32) -> (i32, i32) {
    %c0_i32 = arith.constant 0 : i32
    %c0_i32_0 = arith.constant 0 : i32
    return %arg0, %c0_i32 : i32, i32
  }
  func.func @transform_20(%arg0: i32, %arg1: i32) -> (i32, i32) {
    %c0_i32 = arith.constant 0 : i32
    %c0_i32_0 = arith.constant 0 : i32
    return %arg0, %c0_i32 : i32, i32
  }
}

</mosaic_0001>

<bundles_post_ra>
// kernel: tpu_custom_call.1
= control target key start
LH: loop header
LB: loop body
LE: loop exit
PB: predicated region body
PF: predicated region fallthrough
CT: control target
= control target key end

     0   :  { %s3311_s0 = inlined_call_operand.vmem [shape: bf16[16,32], index: 0, kind: input, shape index: {}]   ;;  %s3312_s1 = inlined_call_operand.vmem [shape: f32[2,1,8], index: 1, kind: input, shape index: {}]   ;;  %s3313_s2 = inlined_call_operand.vmem [shape: bf16[2,32,96], index: 2, kind: input, shape index: {}]   ;;  %s3314_s3 = inlined_call_operand.vmem [shape: f32[2,1,96], index: 3, kind: input, shape index: {}]   ;;  %s3315_s4 = inlined_call_operand.vmem [shape: bf16[2,32,32], index: 4, kind: input, shape index: {}]   ;;  %s3316_s5 = inlined_call_operand.vmem [shape: f32[2,1,32], index: 5, kind: input, shape index: {}]   ;;  %s3317_s6 = inlined_call_operand.hbm [shape: f32[2,1,32], index: 6, kind: input, shape index: {}]   ;;  %s3318_s7 = inlined_call_operand.hbm [shape: f32[2,1,32], index: 7, kind: input, shape index: {}]   ;;  %s3319_s8 = inlined_call_operand.vmem [shape: bf16[2,32,64], index: 8, kind: input, shape index: {}]   ;;  %s3320_s9 = inlined_call_operand.hbm [shape: f32[2,1,64], index: 9, kind: input, shape index: {}]   ;;  %s3321_s10 = inlined_call_operand.vmem [shape: bf16[2,64,32], index: 10, kind: input, shape index: {}]   ;;  %s3322_s11 = inlined_call_operand.vmem [shape: f32[2,1,32], index: 11, kind: input, shape index: {}]   ;;  %s3323_s12 = inlined_call_operand.vmem [shape: f32[2,1,32], index: 12, kind: input, shape index: {}]   ;;  %s3324_s13 = inlined_call_operand.vmem [shape: f32[2,1,32], index: 13, kind: input, shape index: {}]   ;;  %s3325_s14 = inlined_call_operand.vmem [shape: bf16[32,32], index: 14, kind: input, shape index: {}]   ;;  %s3326_s15 = inlined_call_operand.vmem [shape: f32[1,32], index: 15, kind: input, shape index: {}]   ;;  %s3327_s16 = inlined_call_operand.vmem [shape: bf16[32,1], index: 16, kind: input, shape index: {}]   ;;  %s3328_s17 = inlined_call_operand.<no memory space> [shape: f32[1,1], index: 17, kind: input, shape index: {}]   ;;  %s3329_s18 = inlined_call_operand.vmem [shape: f32[2,1], index: 18, kind: input, shape index: {}]   ;;  %s3330_s19 = inlined_call_operand.vmem [shape: f32[2,1], index: 19, kind: output, shape index: {0}]   ;;  %s3331_s20 = inlined_call_operand.vmem [shape: f32[2,1], index: 20, kind: output, shape index: {1}]  }
   0x1   :  { %3341 = sst [smem:[#allocation18_spill]] %s3311_s0  ;;  %v26_v0 = vstv %s3328_s17 }
   0x2   :  { %3342 = sst [smem:[#allocation19_spill]] %s3312_s1  ;;  %27 = vst [vmem:[#allocation4] sm:$0x1] %v26_v0 }
   0x3   :  { %3343 = sst [smem:[#allocation20_spill]] %s3313_s2 }
   0x4   :  { %3344 = sst [smem:[#allocation21_spill]] %s3314_s3 }
   0x5   :  { %3345 = sst [smem:[#allocation22_spill]] %s3315_s4 }
   0x6   :  { %3346 = sst [smem:[#allocation23_spill]] %s3317_s6 }
   0x7   :  { %3347 = sst [smem:[#allocation24_spill]] %s3318_s7 }
   0x8   :  { %3348 = sst [smem:[#allocation25_spill]] %s3325_s14 }
   0x9   :  { %3349 = sst [smem:[#allocation26_spill]] %s3326_s15 }
   0xa   :  { %3350 = sst [smem:[#allocation27_spill]] %s3327_s16 }
   0xb   :  { %3351 = sst [smem:[#allocation28_spill]] %s3329_s18 }
   0xc   :  { %3352 = sst [smem:[#allocation29_spill]] %s3330_s19 }
   0xd   :  { %3353 = sst [smem:[#allocation30_spill]] %s3331_s20 }
   0xe   :  { %28 = vsyncpa [#allocation6], 0 }
   0xf   :  { %30 = vsyncpa [#allocation6 + $0x1], 0 }
  0x10   :  { %31 = vsyncpa [#allocation8], 0 }
  0x11   :  { %33 = vsyncpa [#allocation8 + $0x1], 0  ;;  %s2878_s23 = smov 0   ;;  %s2880_s24 = smov 0  }
  0x12   :  { %s2882_s2 = smov 0   ;;  %s2884_s25 = smov 0  }
  0x13   :  { %s2886_s3 = smov 0   ;;  %s2888_s26 = smov 0  }
  0x14 LB: > { %3354 = sst [smem:[#allocation14_spill]] %s2745_s2  ;;  %s3333_s17 = sadd.s32 4294967295, %s2757_s26   ;;  %s2757_s26 = sphi %s2888_s26, %s39_s26   ;;  %s2753_s3 = sphi %s2886_s3, %s3388_s3   ;;  %s2749_s25 = sphi %s2884_s25, %s3387_s25   ;;  %s2745_s2 = sphi %s2882_s2, %s3386_s2   ;;  %s2741_s24 = sphi %s2880_s24, %s3390_s24   ;;  %s2737_s23 = sphi %s2878_s23, %s3389_s23  }
  0x15   : > { %3355 = sst [smem:[#allocation15_spill]] %s2753_s3  ;;  %s48_s27 = sadd.s32 1, %s2753_s3 }
  0x16   : > { %p49_p0 = scmp.ge.s32.totalorder %s48_s27, 2  ;;  %s188_s28 = sadd.s32 1, %s2745_s2 }
  0x17   : > { %p195_p1 = scmp.ne.s32.totalorder %s2745_s2, %s2741_s24  ;;  %p196_p2 = scmp.eq.s32.totalorder %s2757_s26, 0 }
  0x18   : > { %s3392_s27 = smov (%p49_p0, %s48_s27), 0  ;;  %p201_p4 = scmp.ne.s32.totalorder %s2741_s24, %s2737_s23 }
  0x19   : > { %3356 = sst [smem:[#allocation16_spill]] %s3392_s27  ;;  %p197_p3 = por %p196_p2, %p195_p1 }
  0x1a   : > { %s185_s4 = ssub.s32 %s2753_s3, %s3392_s27  ;;  %p202_p5 = scmp.eq.s32.totalorder %s3333_s17, 0 }
  0x1b   : > { %p186_p6 = scmp.eq.s32.totalorder %s185_s4, 0  ;;  %p2492_p8 = scmp.lt.s32.totalorder %s2757_s26, 2 }
  0x1c   : > { %p2919_p7 = por %p202_p5, %p201_p4  ;;  %s2928_s0 = sand.u32 1, %s2745_s2  }
  0x1d   : > { %s2925_s30 = scalar_select %p186_p6, %s2745_s2, %s188_s28  }
  0x1e   : > { %s3357_s29 = scalar_select %p2919_p7, 1, 0 }
  0x1f   : > { %3358 = sst [smem:[#allocation17_spill]] %s2925_s30  ;;  %s2931_s21 = sshll.u32 %s2753_s3, 4 }
  0x20   : > { %p2933_p9 = pnand %p2492_p8, %p197_p3  ;;  %s641_s22 = sand.u32 1, %s2757_s26  }
  0x21   : > { %s3360_s7 = sld [smem:[#allocation24_spill]]  ;;  %s644_s28 = scalar_lea.vmem [#allocation7], %s2928_s0 }
  0x22   : > { %s3359_s1 = scalar_select %p2933_p9, 1, 0 }
  0x23   : > { %s651_s27 = sshll.u32 %s644_s28, 4  ;;  %s2949_s3 = scalar_lea.sflag [#allocation8], %s641_s22  ;;  %s2946_s27 = int_to_ptr.vmem [resolvable:$true] %s651_s27 }
  0x24   : > { %p2955_p13 = pneg %p2933_p9 }
  0x27   : > { %s2942_s17 = scalar_lea.hbm %s3360_s7, %s2931_s21  ;;  %s2616_s28 = scalar_lea.hbm %s3360_s7, 32 }
  0x28   : > { %s2611_s30 = scalar_lea.hbm %s2942_s17, 16  ;;  %p2617_p2 = scmp.lt.u32.totalorder %s2942_s17, %s3360_s7 }
  0x29   : > { %p2612_p12 = scmp.ne.s32.totalorder %s2942_s17, %s2611_s30  ;;  %p2618_p3 = scmp.lt.u32.totalorder %s2616_s28, %s2611_s30 }
  0x2a   : > { %p2620_p5 = scmp.lt.u32.totalorder %s2611_s30, %s2942_s17 }
  0x2b   : > { %p2614_p0 = pnand %p2955_p13, %p2612_p12  ;;  %p2619_p4 = por %p2618_p3, %p2617_p2 }
  0x2d   : > { %p2615_p1 = pneg %p2614_p0  ;;  %p2621_p6 = por %p2620_p5, %p2619_p4 }
  0x2f   : > { %p2622_p8 = pnand %p2621_p6, %p2615_p1 }
  0x31   : > { %2625 = shalt.err (!%p2622_p8)
}
  0x32   : > { %s2626_s22 = scalar_lea.vmem %s2946_s27, 16  ;;  %s2759_s23 = smov [#allocation7]  }
  0x33   : > { %p2627_p12 = scmp.ne.s32.totalorder %s2946_s27, %s2626_s22  ;;  %s2631_s4 = sshll.u32 %s2759_s23, 4  ;;  %s2632_s4 = int_to_ptr.vmem [resolvable:$false] %s2631_s4 }
  0x34   : > { %s2633_s18 = scalar_lea.vmem %s2632_s4, 32  ;;  %p2634_p11 = scmp.lt.s32.totalorder %s2946_s27, %s2632_s4 }
  0x35   : > { %p2629_p0 = pnand %p2627_p12, %p2955_p13  ;;  %p2635_p7 = scmp.lt.s32.totalorder %s2633_s18, %s2626_s22 }
  0x37   : > { %p2630_p10 = pneg %p2629_p0  ;;  %p2636_p2 = por %p2635_p7, %p2634_p11 }
  0x39   : > { %p2637_p3 = pnand %p2636_p2, %p2630_p10 }
  0x3b   : > { %2640 = shalt.err (!%p2637_p3)
}
  0x3c   : > { %2488 = dma.hbm_to_vmem [thread:$0]  (!%p2933_p9), %s2942_s17, 16, %s2946_s27, %s2949_s3  }
  0x3d   : > { %p3362_p1 = scmp.lt.s32.totalorder %s2757_s26, 3  ;;  %p3363_p4 = scmp.ge.s32.totalorder %s2757_s26, 1 }
  0x3e   : > { %s3365_s6 = sld [smem:[#allocation23_spill]]  ;;  %s627_s23 = scalar_lea.vmem [#allocation5], %s2928_s0 }
  0x3f   : > { %p2983_p5 = pnand %p3363_p4, %p3362_p1  ;;  %s634_s4 = sshll.u32 %s627_s23, 4  ;;  %s2994_s4 = int_to_ptr.vmem [resolvable:$true] %s634_s4 }
  0x40   : > { %s3000_s18 = scalar_lea.hbm %s3320_s9, %s2931_s21  ;;  %s625_s7 = scalar_lea.sflag [#allocation6], %s2928_s0 }
  0x41   : > { %s3364_s20 = scalar_select %p2983_p5, 1, 0 }
  0x44   : > { %s2991_s22 = scalar_lea.hbm %s3365_s6, %s2931_s21  ;;  %s2646_s15 = scalar_lea.hbm %s3365_s6, 32 }
  0x45   : > { %s2641_s19 = scalar_lea.hbm %s2991_s22, 16  ;;  %p2647_p6 = scmp.lt.u32.totalorder %s2991_s22, %s3365_s6 }
  0x46   : > { %p2642_p7 = scmp.ne.s32.totalorder %s2991_s22, %s2641_s19  ;;  %p2648_p8 = scmp.lt.u32.totalorder %s2646_s15, %s2641_s19 }
  0x47   : > { %p2650_p0 = scmp.lt.u32.totalorder %s2641_s19, %s2991_s22 }
  0x48   : > { %p2644_p10 = pnand %p2642_p7, %p2955_p13  ;;  %p2649_p12 = por %p2648_p8, %p2647_p6 }
  0x4a   : > { %p2645_p11 = pneg %p2644_p10  ;;  %p2651_p2 = por %p2650_p0, %p2649_p12 }
  0x4c   : > { %p2652_p3 = pnand %p2651_p2, %p2645_p11 }
  0x4e   : > { %2655 = shalt.err (!%p2652_p3)
}
  0x4f   : > { %s2656_s21 = scalar_lea.vmem %s2994_s4, 16  ;;  %s2760_s23 = smov [#allocation5]  }
  0x50   : > { %p2657_p1 = scmp.ne.s32.totalorder %s2994_s4, %s2656_s21  ;;  %s2661_s17 = sshll.u32 %s2760_s23, 4  ;;  %s2662_s17 = int_to_ptr.vmem [resolvable:$false] %s2661_s17 }
  0x51   : > { %s2663_s14 = scalar_lea.vmem %s2662_s17, 32  ;;  %p2664_p10 = scmp.lt.s32.totalorder %s2994_s4, %s2662_s17 }
  0x52   : > { %p2659_p4 = pnand %p2657_p1, %p2955_p13  ;;  %p2665_p5 = scmp.lt.s32.totalorder %s2663_s14, %s2656_s21 }
  0x54   : > { %p2660_p7 = pneg %p2659_p4  ;;  %p2666_p6 = por %p2665_p5, %p2664_p10 }
  0x56   : > { %p2667_p8 = pnand %p2666_p6, %p2660_p7 }
  0x58   : > { %2670 = shalt.err (!%p2667_p8)
}
  0x59   : > { %2485 = dma.hbm_to_vmem [thread:$0]  (!%p2933_p9), %s2991_s22, 16, %s2994_s4, %s625_s7  }
  0x5a   : > { %s669_s15 = scalar_lea.vmem [#allocation9], %s2928_s0  ;;  %s2671_s19 = scalar_lea.hbm %s3000_s18, 16 }
  0x5b   : > { %s676_s16 = sshll.u32 %s669_s15, 4  ;;  %p2672_p11 = scmp.ne.s32.totalorder %s3000_s18, %s2671_s19  ;;  %s677_s16 = int_to_ptr.vmem [resolvable:$true] %s676_s16 }
  0x5c   : > { %s2676_s28 = scalar_lea.hbm %s3320_s9, 32  ;;  %p2677_p0 = scmp.lt.u32.totalorder %s3000_s18, %s3320_s9 }
  0x5d   : > { %p2674_p5 = pnand %p2672_p11, %p2955_p13  ;;  %p2678_p2 = scmp.lt.u32.totalorder %s2676_s28, %s2671_s19 }
  0x5e   : > { %p2680_p1 = scmp.lt.u32.totalorder %s2671_s19, %s3000_s18 }
  0x5f   : > { %p2675_p12 = pneg %p2674_p5  ;;  %p2679_p3 = por %p2678_p2, %p2677_p0 }
  0x61   : > { %p2681_p4 = por %p2680_p1, %p2679_p3 }
  0x63   : > { %p2682_p7 = pnand %p2681_p4, %p2675_p12 }
  0x65   : > { %2685 = shalt.err (!%p2682_p7)
}
  0x66   : > { %s2686_s7 = scalar_lea.vmem %s677_s16, 16  ;;  %s2761_s0 = smov [#allocation9]  }
  0x67   : > { %p2687_p10 = scmp.ne.s32.totalorder %s677_s16, %s2686_s7  ;;  %s2691_s22 = sshll.u32 %s2761_s0, 4  ;;  %s2692_s22 = int_to_ptr.vmem [resolvable:$false] %s2691_s22 }
  0x68   : > { %s2693_s4 = scalar_lea.vmem %s2692_s22, 32  ;;  %p2694_p11 = scmp.lt.s32.totalorder %s677_s16, %s2692_s22 }
  0x69   : > { %p2689_p6 = pnand %p2687_p10, %p2955_p13  ;;  %p2695_p5 = scmp.lt.s32.totalorder %s2693_s4, %s2686_s7 }
  0x6b   : > { %p2690_p8 = pneg %p2689_p6  ;;  %p2696_p9 = por %p2695_p5, %p2694_p11 }
  0x6d   : > { %p2697_p0 = pnand %p2696_p9, %p2690_p8 }
  0x6f   : > { %2700 = shalt.err (!%p2697_p0)
}
  0x70   : > { %p3366_p2 = scmp.ne.s32.totalorder %s3359_s1, 0  ;;  %p3367_p12 = scmp.ne.s32.totalorder %s3364_s20, 0 }
  0x71   : > { %s3046_s2 = sand.u32 (!%p3367_p12), 1, %s2741_s24   ;;  %p3368_p13 = scmp.ne.s32.totalorder (!%p3367_p12), %s3357_s29, 0 }
  0x72   : > { %2491 = dma.hbm_to_vmem [thread:$0]  (!%p3366_p2), %s3000_s18, 16, %s677_s16, %s2949_s3  }
  0x73   : > { %711 = sbr.rel (%p3367_p12) target bundleno = 3281 (0xcd1), region = 92  ;;  %s714_s17 = scalar_lea.sflag (!%p3367_p12), [#allocation6], %s3046_s2 }
  0x7a   : > { %2726 = dma.done.wait (%p3368_p13), %s714_s17, 16  }
  0x7b   : > { %2728 = vsyncadd (%p3368_p13), %s714_s17, 4294967280  ;;  %s3369_s1 = sadd.s32 4294967295, %s2757_s26  }
  0x7c   : > { %s721_s3 = sand.u32 1, %s3369_s1  }
  0x7d   : > { %s722_s20 = scalar_lea.sflag [#allocation8], %s721_s3 }
  0x7e   : > { %2730 = dma.done.wait (%p3368_p13), %s722_s20, 32  }
  0x7f   : > { %2732 = vsyncadd (%p3368_p13), %s722_s20, 4294967264  ;;  %p845_p9 = scmp.lt.s32.totalorder %s2749_s25, 1  ;;  %s3370_s30 = sld [smem:[#allocation21_spill]] }
  0x80   : > { %s3371_s23 = sld [smem:[#allocation20_spill]]  ;;  %s3372_s4 = sld [smem:[#allocation22_spill]] }
  0x81   : > { %s3063_s15 = scalar_select %p845_p9, %s2749_s25, 1 }
  0x82   : > { %s732_s18 = scalar_lea.vmem [#allocation9], %s3046_s2  ;;  %p2289_p3 = scmp.ne.s32.totalorder %s2749_s25, 0 }
  0x83   : > { %s2336_s16 = sshll.u32 %s3063_s15, 4  ;;  %s2339_s19 = sshll.u32 %s3063_s15, 5 }
  0x84   : > { %s3085_s6 = scalar_lea.vmem %s3319_s8, %s2336_s16  ;;  %s873_s29 = scalar_lea.vmem %s3322_s11, %s3063_s15 }
  0x85   : > { %s852_s28 = scalar_lea.vmem %s3370_s30, %s3063_s15  ;;  %s3095_s0 = scalar_lea.vmem %s3321_s10, %s2339_s19 }
  0x86   : > { %s849_s7 = scalar_lea.vmem %s3371_s23, %s2336_s16  ;;  %s3076_s17 = scalar_lea.vmem %s3372_s4, %s2336_s16 }
  0x87   : > { %s876_s1 = scalar_lea.vmem %s3323_s12, %s3063_s15  ;;  %s879_s14 = scalar_lea.vmem %s3324_s13, %s3063_s15 }
  0x88   : > { %896 = sbr.rel (%p2289_p3) target bundleno = 147 (0x93), region = 108  ;;  %s3373_s30 = sld [smem:[#allocation18_spill]] (!%p2289_p3) }
  0x8e   : > { %v934_v1 = vld [vmem:[%s3373_s30] sm:$0xff] (!%p2289_p3) }
  0x8f   : > { %935 = vst [vmem:[#allocation2] sm:$0xff] %v934_v1 }
  0x90   : > { %943 = vsyncadd [#allocation3], 128 }
  0x91   : > { %2733 = dma.done.wait [#allocation3], 128 }
  0x92   : > { %2734 = vsyncadd [#allocation3], 4294967168 }
  0x93 PF: > { %v2559_v2 = vld [vmem:[%s849_s7] sm:$0xff]   ;;  %v2762_v3 = vmov 0.0   ;;  %v2560_v4 = vld [vmem:[%s849_s7 + $0x8] sm:$0xff]   ;;  %vm2763_vm0 = vmmov 0   ;;  %vm974_vm1 = vcmask 261120   ;;  %s2764_s21 = smov 112   ;;  %s3376_s20 = scalar_lea.vmem %s3316_s5, %s3063_s15 }
  0x94   : > { %2376 = vmatprep.subr.bf16.mxu0 %v2762_v3  ;;  %2384 = vmatprep.subr.bf16.mxu1 %v2762_v3  ;;  %v2290_v6 = vld [vmem:[%s852_s28] ss:$0 sm:$0xff]  ;;  %s2765_s23 = smov 96   ;;  %vm1048_vm2 = vcmask 130048   ;;  %s3375_s4 = sld [smem:[#allocation19_spill]]  ;;  %vm1242_vm3 = vcmask 64512  }
  0x95   : > { %2377 = vmatpush3.bf16.msra.mxu0 %v2559_v2  ;;  %2380 = vmatprep.mubr.msk.bf16.mxu0 %vm2763_vm0, %v2762_v3  ;;  %s2766_s27 = smov 64   ;;  %vm1296_vm4 = vcmask 1043456   ;;  %s2767_s30 = smov 16   ;;  %vm1735_vm5 = vcmask 523264  }
  0x96   : > { %2378 = vmatprep.subr.bf16.mxu0 %v2762_v3  ;;  %2386 = vmatprep.mubr.msk.bf16.mxu1 %vm2763_vm0, %v2762_v3  ;;  %s3377_s19 = scalar_lea.vmem [#allocation5], %s3046_s2  ;;  %p2322_p1 = scmp.ne.s32.totalorder %s2749_s25, 1 }
  0x97   : > { %s3379_s22 = sld [smem:[#allocation25_spill]] (!%p2322_p1)  ;;  %vm2769_vm6 = vmmov (!%p2322_p1), 0   ;;  %vm1850_vm7 = vcmask (!%p2322_p1), 1041409   ;;  %s3380_s16 = sld [smem:[#allocation27_spill]] (!%p2322_p1)  ;;  %vm1976_vm8 = vcmask (!%p2322_p1), 1024  }
  0x98   : > { %s3384_s28 = sld [smem:[#allocation30_spill]] (!%p2322_p1) }
  0x99   : > { %2379 = vmatpush3.bf16.msra.mxu0 %v2560_v4 }
  0x9a   : > { %v3117_v5 = vld [vmem:[#allocation2] sm:$0xff]  ;;  %2390 = vmatprep.subr.bf16.mxu0 %v2762_v3 }
  0x9b   : > { %v2295_v29 = vld [vmem:[%s3375_s4 + $0x1] ss:$0 sm:$0xff]  ;;  %v2294_v34 = vld [vmem:[%s3375_s4] ss:$0 sm:$0xff] }
  0x9c   : > { %2381 = vmatmul.mubr.msk.bf16.vlgmr.msra.gmra.mrb[0].mxu0 %vm974_vm1, %v3117_v5 }
  0x9d   : > { %2392 = vmatprep.mubr.msk.bf16.mxu0 %vm2763_vm0, %v2762_v3 }
 0x16f   : > { %v1012_v7 = vpop.f32.mrb[0].mxu0 }
 0x170   : > { %v2382_v8 = vpop.f32.mrb[1].mxu0  ;;  %v1013_v10 = vadd.f32 %v2290_v6, %v1012_v7 }
 0x171   : > { %v1015_v9 = vpop.f32.mrb[2].mxu0 }
 0x172   : > { %v1016_v11 = vadd.f32 %v2290_v6, %v1015_v9  ;;  %v2383_v12 = vpop.f32.mrb[3].mxu0  ;;  %v3132_v15 = vpack.c.bf16 %v1013_v10, %v1013_v10 }
 0x174   : > { %v3129_v13 = vpack.c.bf16 %v1016_v11, %v1016_v11  ;;  %v2549_v14 = vpack.i.bf16 %v1016_v11, %v1013_v10 }
 0x176   : > { %2550 = vrot.lane.b32.xlu0 %v2549_v14, %s2764_s21  ;;  %1096 = vrot.lane.b32.xlu1 %v3129_v13, %s2765_s23 }
 0x17a   : > { %1046 = vrot.lane.b32.xlu0 %v3132_v15, %s2765_s23 }
 0x1e8   : > { %v2551_v16 = vpop.permute.xlu0 %2550  ;;  %v1097_v17 = vpop.permute.xlu1 %1096 }
 0x1e9   : > { %v2553_v18 = vunpack.i.h.bf16 %v2551_v16  ;;  %v2552_v19 = vunpack.i.l.bf16 %v2551_v16  ;;  %v1102_v20 = vsel %vm1048_vm2, %v1097_v17, 0 }
 0x1ea   : > { %2391 = vmatpush3.bf16.xpose.msra.mxu0 %v1102_v20 }
 0x1eb   : > { %v3136_v21 = vpack.c.bf16 %v2553_v18, %v2553_v18  ;;  %v3138_v22 = vpack.c.bf16 %v2552_v19, %v2552_v19  ;;  %2402 = vmatprep.subr.bf16.mxu0 %v2762_v3 }
 0x1ec   : > { %v1047_v23 = vpop.permute.xlu0 %1046 }
 0x1ed   : > { %1194 = vrot.lane.b32.xlu0 %v3136_v21, %s2765_s23  ;;  %1145 = vrot.lane.b32.xlu1 %v3138_v22, %s2765_s23  ;;  %v1053_v24 = vsel %vm1048_vm2, %v1047_v23, 0 }
 0x1ee   : > { %2385 = vmatpush3.bf16.xpose.msra.mxu1 %v1053_v24 }
 0x1ef   : > { %2396 = vmatprep.subr.bf16.mxu1 %v2762_v3 }
 0x1f1   : > { %2393 = vmatmul.mubr.msk.bf16.vlgmr.msra.gmra.mrb[4].mxu0 %vm1048_vm2, %v3129_v13 }
 0x1f2   : > { %2404 = vmatprep.mubr.msk.bf16.mxu0 %vm2763_vm0, %v2762_v3 }
 0x1f5   : > { %2387 = vmatmul.mubr.msk.bf16.vlgmr.msra.gmra.mrb[0].mxu1 %vm1048_vm2, %v3132_v15 }
 0x1f6   : > { %2398 = vmatprep.mubr.msk.bf16.mxu1 %vm2763_vm0, %v2762_v3 }
 0x25f   : > { %v1195_v25 = vpop.permute.xlu0 %1194  ;;  %v1146_v26 = vpop.permute.xlu1 %1145 }
 0x260   : > { %v1200_v27 = vsel %vm1048_vm2, %v1195_v25, 0  ;;  %v1151_v28 = vsel %vm1048_vm2, %v1146_v26, 0 }
 0x261   : > { %2397 = vmatpush3.bf16.xpose.msra.mxu1 %v1151_v28  ;;  %2403 = vmatpush3.bf16.xpose.msra.mxu0 %v1200_v27 }
 0x262   : > { %2408 = vmatprep.subr.bf16.mxu1 %v2762_v3  ;;  %2414 = vmatprep.subr.bf16.mxu0 %v2762_v3 }
 0x268   : > { %2399 = vmatmul.mubr.msk.bf16.vlgmr.msra.gmra.mrb[4].mxu1 %vm1048_vm2, %v3138_v22  ;;  %2405 = vmatmul.mubr.msk.bf16.vlgmr.msra.gmra.mrb[8].mxu0 %vm1048_vm2, %v3136_v21 }
 0x269   : > { %2410 = vmatprep.mubr.msk.bf16.mxu1 %vm2763_vm0, %v2762_v3  ;;  %2416 = vmatprep.mubr.msk.bf16.mxu0 %vm2763_vm0, %v2762_v3 }
 0x2c4   : > { %v1138_v30 = vpop.f32.mrb[4].mxu0 }
 0x2c5   : > { %v1139_v31 = vadd.f32 %v2295_v29, %v1138_v30  ;;  %v2394_v32 = vpop.f32.mrb[5].mxu0 }
 0x2c6   : > { %v1141_v33 = vpop.f32.mrb[6].mxu0 }
 0x2c7   : > { %v2395_v35 = vpop.f32.mrb[7].mxu0  ;;  %v1246_v36 = vsel %vm1242_vm3, %v1139_v31, -inf }
 0x2c8   : > { %v1089_v37 = vpop.f32.mrb[0].mxu1  ;;  %1247 = vmax.xlane.f32.xlu0 %v1246_v36 }
 0x2c9   : > { %v1090_v38 = vadd.f32 %v2294_v34, %v1089_v37  ;;  %v2388_v39 = vpop.f32.mrb[1].mxu1  ;;  %v2561_v37 = vld [vmem:[%s3076_s17] sm:$0xff]  }
 0x2ca   : > { %v1092_v40 = vpop.f32.mrb[2].mxu1 }
 0x2cb   : > { %v2389_v41 = vpop.f32.mrb[3].mxu1  ;;  %v1243_v42 = vsel %vm1242_vm3, %v1090_v38, -inf }
 0x2cc   : > { %1244 = vmax.xlane.f32.xlu1 %v1243_v42 }
 0x33b   : > { %v1187_v43 = vpop.f32.mrb[4].mxu1  ;;  %v1236_v44 = vpop.f32.mrb[8].mxu0 }
 0x33c   : > { %v1188_v45 = vadd.f32 %v2294_v34, %v1187_v43  ;;  %v1237_v46 = vadd.f32 %v2295_v29, %v1236_v44  ;;  %v2400_v47 = vpop.f32.mrb[5].mxu1  ;;  %v2406_v48 = vpop.f32.mrb[9].mxu0 }
 0x33d   : > { %v1190_v49 = vpop.f32.mrb[6].mxu1  ;;  %v1239_v50 = vpop.f32.mrb[10].mxu0 }
 0x33e   : > { %v2401_v51 = vpop.f32.mrb[7].mxu1  ;;  %v2407_v52 = vpop.f32.mrb[11].mxu0  ;;  %v1249_v53 = vsel %vm1242_vm3, %v1188_v45, -inf  ;;  %v1252_v54 = vsel %vm1242_vm3, %v1237_v46, -inf }
 0x33f   : > { %1250 = vmax.xlane.f32.xlu0 %v1249_v53  ;;  %1253 = vmax.xlane.f32.xlu1 %v1252_v54 }
 0x350   : > { %1340 = vrot.lane.b32.xlu1 %v3129_v13, %s2766_s27 }
 0x355   : > { %1291 = vrot.lane.b32.xlu0 %v3132_v15, %s2766_s27  ;;  %v1248_v55 = vpop.xlane.xlu0 %1247 }
 0x356   : > { %v1256_v57 = vsub.f32 %v1139_v31, %v1248_v55 }
 0x358   : > { %v1261_v59 = vmul.f32 1.442695, %v1256_v57 }
 0x359   : > { %v1245_v56 = vpop.xlane.xlu1 %1244 }
 0x35a   : > { %v1255_v58 = vsub.f32 %v1090_v38, %v1245_v56  ;;  %2569 = vpow2.f32 %v1261_v59 }
 0x35c   : > { %v1259_v60 = vmul.f32 1.442695, %v1255_v58 }
 0x35e   : > { %2571 = vpow2.f32 %v1259_v60 }
 0x364   : > { %v2570_v61 = vpop.eup %2569 }
 0x365   : > { %v1270_v0 = vsel %vm1242_vm3, %v2570_v61, 0.0 }
 0x368   : > { %v2572_v62 = vpop.eup %2571 }
 0x369   : > { %v1267_v63 = vsel %vm1242_vm3, %v2572_v62, 0.0 }
 0x374   : > { %1268 = vadd.xlane.f32.xlu0 %v1267_v63  ;;  %1271 = vadd.xlane.f32.xlu1 %v1270_v0  ;;  %v949_v63 = vunpack.c.l.bf16 %v3117_v5 }
 0x3cc   : > { %v1251_v1 = vpop.xlane.xlu0 %1250  ;;  %v1254_v2 = vpop.xlane.xlu1 %1253 }
 0x3cd   : > { %v1257_v4 = vsub.f32 %v1188_v45, %v1251_v1  ;;  %v1258_v6 = vsub.f32 %v1237_v46, %v1254_v2  ;;  %v2562_v46 = vld [vmem:[%s3076_s17 + $0x8] sm:$0xff]  }
 0x3cf   : > { %v1263_v7 = vmul.f32 1.442695, %v1257_v4  ;;  %v1265_v8 = vmul.f32 1.442695, %v1258_v6  ;;  %v950_v4 = vunpack.c.h.bf16 %v3117_v5 }
 0x3d0   : > { %v1292_v9 = vpop.permute.xlu0 %1291  ;;  %v1341_v10 = vpop.permute.xlu1 %1340 }
 0x3d1   : > { %2573 = vpow2.f32 %v1263_v7  ;;  %v1298_v11 = vsel %vm1296_vm4, %v1292_v9, 0  ;;  %v1346_v12 = vsel %vm1296_vm4, %v1341_v10, 0 }
 0x3d2   : > { %2575 = vpow2.f32 %v1265_v8  ;;  %2409 = vmatpush3.bf16.msra.mxu1 %v1298_v11  ;;  %2415 = vmatpush3.bf16.msra.mxu0 %v1346_v12 }
 0x3d3   : > { %2420 = vmatprep.subr.bf16.mxu1 %v2762_v3  ;;  %2426 = vmatprep.subr.bf16.mxu0 %v2762_v3 }
 0x3db   : > { %v2574_v13 = vpop.eup %2573 }
 0x3dc   : > { %v2576_v14 = vpop.eup %2575  ;;  %v1273_v15 = vsel %vm1242_vm3, %v2574_v13, 0.0 }
 0x3dd   : > { %1274 = vadd.xlane.f32.xlu0 %v1273_v15  ;;  %v1276_v16 = vsel %vm1242_vm3, %v2576_v14, 0.0 }
 0x3de   : > { %1277 = vadd.xlane.f32.xlu1 %v1276_v16 }
 0x3ef   : > { %1388 = vrot.lane.b32.xlu1 %v3138_v22, %s2766_s27 }
 0x3f3   : > { %1436 = vrot.lane.b32.xlu0 %v3136_v21, %s2766_s27 }
 0x401   : > { %v1269_v17 = vpop.xlane.xlu0 %1268  ;;  %v1272_v18 = vpop.xlane.xlu1 %1271 }
 0x402   : > { %2577 = vrcp.f32 %v1269_v17 }
 0x403   : > { %2579 = vrcp.f32 %v1272_v18 }
 0x40c   : > { %v2578_v19 = vpop.eup %2577 }
 0x40d   : > { %v2580_v20 = vpop.eup %2579  ;;  %v1283_v23 = vmul.f32 %v2578_v19, %v2572_v62  ;;  %v2304_v62 = vld [vmem:[%s3376_s20] ss:$0 sm:$0xff]  ;;  %s3381_s20 = sld [smem:[#allocation26_spill]] (!%p2322_p1) }
 0x40e   : > { %v1284_v24 = vmul.f32 %v2580_v20, %v2570_v61 }
 0x40f   : > { %v1287_v25 = vpack.c.bf16 %v1283_v23, %v1283_v23 }
 0x410   : > { %v1288_v26 = vpack.c.bf16 %v1284_v24, %v1284_v24  ;;  %v2563_v24 = vld [vmem:[%s3085_s6] sm:$0xff]  }
 0x411   : > { %2411 = vmatmul.mubr.msk.bf16.vlgmr.msra.gmra.mrb[8].mxu1 %vm1242_vm3, %v1287_v25  ;;  %v2564_v25 = vld [vmem:[%s3085_s6 + $0x8] sm:$0xff]   ;;  %s3378_s6 = scalar_lea.vmem [#allocation7], %s3046_s2  ;;  %s3382_s2 = sld [smem:[#allocation29_spill]] (!%p2322_p1) }
 0x412   : > { %2417 = vmatmul.mubr.msk.bf16.vlgmr.msra.gmra.mrb[12].mxu0 %vm1242_vm3, %v1288_v26  ;;  %2422 = vmatprep.mubr.msk.bf16.mxu1 %vm2763_vm0, %v2762_v3 }
 0x413   : > { %2428 = vmatprep.mubr.msk.bf16.mxu0 %vm2763_vm0, %v2762_v3 }
 0x46a   : > { %v1275_v21 = vpop.xlane.xlu0 %1274 }
 0x46b   : > { %2581 = vrcp.f32 %v1275_v21  ;;  %v1278_v22 = vpop.xlane.xlu1 %1277 }
 0x46c   : > { %2583 = vrcp.f32 %v1278_v22 }
 0x46e   : > { %v1437_v27 = vpop.permute.xlu0 %1436 }
 0x46f   : > { %v1442_v28 = vsel %vm1296_vm4, %v1437_v27, 0  ;;  %v1389_v29 = vpop.permute.xlu1 %1388 }
 0x470   : > { %v1394_v30 = vsel %vm1296_vm4, %v1389_v29, 0  ;;  %2427 = vmatpush3.bf16.msra.mxu0 %v1442_v28 }
 0x471   : > { %2421 = vmatpush3.bf16.msra.mxu1 %v1394_v30  ;;  %2440 = vmatprep.subr.bf16.mxu0 %v2762_v3 }
 0x472   : > { %2432 = vmatprep.subr.bf16.mxu1 %v2762_v3 }
 0x475   : > { %v2582_v31 = vpop.eup %2581 }
 0x476   : > { %v2584_v32 = vpop.eup %2583  ;;  %v1285_v33 = vmul.f32 %v2582_v31, %v2574_v13 }
 0x477   : > { %v1286_v34 = vmul.f32 %v2584_v32, %v2576_v14  ;;  %v2308_v32 = vld [vmem:[%s3377_s19] ss:$0 sm:$0xff] }
 0x478   : > { %v1289_v35 = vpack.c.bf16 %v1285_v33, %v1285_v33 }
 0x479   : > { %v1290_v36 = vpack.c.bf16 %v1286_v34, %v1286_v34 }
 0x47a   : > { %2423 = vmatmul.mubr.msk.bf16.vlgmr.msra.gmra.mrb[12].mxu1 %vm1242_vm3, %v1289_v35 }
 0x47b   : > { %2429 = vmatmul.mubr.msk.bf16.vlgmr.msra.gmra.mrb[16].mxu0 %vm1242_vm3, %v1290_v36  ;;  %2436 = vmatprep.mubr.msk.bf16.mxu1 %vm2763_vm0, %v2762_v3  ;;  %v2309_v36 = vld [vmem:[%s3378_s6] ss:$0 sm:$0xff] }
 0x47c   : > { %2444 = vmatprep.mubr.msk.bf16.mxu0 %vm2763_vm0, %v2762_v3  ;;  %2433 = vmatpush3.bf16.msra.mxu1 %v2561_v37 }
 0x47d   : > { %2434 = vmatprep.subr.bf16.mxu1 %v2762_v3  ;;  %2441 = vmatpush3.bf16.msra.mxu0 %v2563_v24 }
 0x47e   : > { %2442 = vmatprep.subr.bf16.mxu0 %v2762_v3 }
 0x480   : > { %2435 = vmatpush3.bf16.msra.mxu1 %v2562_v46 }
 0x481   : > { %2448 = vmatprep.subr.bf16.mxu1 %v2762_v3  ;;  %2443 = vmatpush3.bf16.msra.mxu0 %v2564_v25 }
 0x4e4   : > { %v1334_v38 = vpop.f32.mrb[8].mxu1 }
 0x4e5   : > { %v1382_v39 = vpop.f32.mrb[12].mxu0  ;;  %v2412_v40 = vpop.f32.mrb[9].mxu1 }
 0x4e6   : > { %v2418_v41 = vpop.f32.mrb[13].mxu0  ;;  %v1337_v42 = vpop.f32.mrb[10].mxu1 }
 0x4e7   : > { %v1385_v43 = vpop.f32.mrb[14].mxu0  ;;  %v2413_v44 = vpop.f32.mrb[11].mxu1  ;;  %v2565_v41 = vld [vmem:[%s3095_s0] sm:$0xff]   ;;  %v2566_v42 = vld [vmem:[%s3095_s0 + $0x8] sm:$0xff]  }
 0x4e8   : > { %v2419_v45 = vpop.f32.mrb[15].mxu0  ;;  %v2567_v43 = vld [vmem:[%s3095_s0 + $0x10] sm:$0xff]   ;;  %v2568_v44 = vld [vmem:[%s3095_s0 + $0x18] sm:$0xff]  }
 0x4e9   : > { %v2310_v45 = vld [vmem:[%s732_s18] ss:$0 sm:$0xff]  ;;  %s3383_s18 = sld [smem:[#allocation28_spill]] (!%p2322_p1) }
 0x54d   : > { %v1430_v47 = vpop.f32.mrb[12].mxu1 }
 0x54e   : > { %v1478_v48 = vpop.f32.mrb[16].mxu0  ;;  %v2424_v49 = vpop.f32.mrb[13].mxu1 }
 0x54f   : > { %v2554_v50 = vpack.i.bf16 %v1478_v48, %v1430_v47  ;;  %v2430_v51 = vpop.f32.mrb[17].mxu0  ;;  %v1433_v52 = vpop.f32.mrb[14].mxu1 }
 0x550   : > { %v1481_v53 = vpop.f32.mrb[18].mxu0  ;;  %v2425_v54 = vpop.f32.mrb[15].mxu1 }
 0x551   : > { %2555 = vrot.lane.b32.xlu1 %v2554_v50, %s2767_s30  ;;  %v2431_v55 = vpop.f32.mrb[19].mxu0 }
 0x5c3   : > { %v2556_v56 = vpop.permute.xlu1 %2555 }
 0x5c4   : > { %v2558_v57 = vunpack.i.h.bf16 %v2556_v56  ;;  %v2557_v58 = vunpack.i.l.bf16 %v2556_v56 }
 0x5c6   : > { %v1493_v59 = vsel %vm1048_vm2, %v1382_v39, %v2558_v57  ;;  %v1492_v60 = vsel %vm1048_vm2, %v1334_v38, %v2557_v58 }
 0x5c7   : > { %v1494_v61 = vpack.c.bf16 %v1493_v59, %v1492_v60 }
 0x5c9   : > { %2437 = vmatmul.mubr.msk.bf16.vlgmr.msra.gmra.mrb[16].mxu1 %vm974_vm1, %v1494_v61 }
 0x5ca   : > { %2456 = vmatprep.mubr.msk.bf16.mxu1 %vm2763_vm0, %v2762_v3  ;;  %2449 = vmatpush3.bf16.msra.mxu1 %v2565_v41 }
 0x5cb   : > { %2450 = vmatprep.subr.bf16.mxu1 %v2762_v3 }
 0x5ce   : > { %2451 = vmatpush3.bf16.msra.mxu1 %v2566_v42 }
 0x5cf   : > { %2452 = vmatprep.subr.bf16.mxu1 %v2762_v3 }
 0x5d2   : > { %2453 = vmatpush3.bf16.msra.mxu1 %v2567_v43 }
 0x5d3   : > { %2454 = vmatprep.subr.bf16.mxu1 %v2762_v3 }
 0x5d6   : > { %2455 = vmatpush3.bf16.msra.mxu1 %v2568_v44 }
 0x69c   : > { %v1555_v0 = vpop.f32.mrb[16].mxu1 }
 0x69d   : > { %v1556_v1 = vadd.f32 %v2304_v62, %v1555_v0  ;;  %v2438_v2 = vpop.f32.mrb[17].mxu1 }
 0x69e   : > { %v1558_v6 = vpop.f32.mrb[18].mxu1 }
 0x69f   : > { %v1559_v7 = vadd.f32 %v2304_v62, %v1558_v6  ;;  %v2439_v8 = vpop.f32.mrb[19].mxu1  ;;  %v1562_v9 = vadd.f32 %v1556_v1, %v949_v63 }
 0x6a0   : > { %v2314_v8 = vld [vmem:[%s873_s29] ss:$0 sm:$0xff] }
 0x6a1   : > { %v1566_v10 = vsel %vm974_vm1, %v1562_v9, 0.0  ;;  %v1563_v11 = vadd.f32 %v1559_v7, %v950_v4 }
 0x6a2   : > { %1567 = vadd.xlane.f32.xlu0 %v1566_v10 }
 0x6a3   : > { %v1569_v12 = vsel %vm974_vm1, %v1563_v11, 0.0 }
 0x6a4   : > { %1570 = vadd.xlane.f32.xlu1 %v1569_v12 }
 0x72f   : > { %v1568_v13 = vpop.xlane.xlu0 %1567 }
 0x730   : > { %v1573_v14 = vmul.f32 0.03125, %v1568_v13 }
 0x731   : > { %v1571_v15 = vpop.xlane.xlu1 %1570 }
 0x732   : > { %v1575_v16 = vsub.f32 %v1562_v9, %v1573_v14  ;;  %v1574_v17 = vmul.f32 0.03125, %v1571_v15 }
 0x734   : > { %v1576_v18 = vsub.f32 %v1563_v11, %v1574_v17  ;;  %v1577_v5 = vmul.f32 %v1575_v16, %v1575_v16 }
 0x736   : > { %v1579_v19 = vsel %vm974_vm1, %v1577_v5, 0.0  ;;  %v1578_v20 = vmul.f32 %v1576_v18, %v1576_v18 }
 0x737   : > { %1580 = vadd.xlane.f32.xlu0 %v1579_v19 }
 0x738   : > { %v1582_v23 = vsel %vm974_vm1, %v1578_v20, 0.0 }
 0x73b   : > { %1583 = vadd.xlane.f32.xlu0 %v1582_v23 }
 0x7c4   : > { %v1581_v26 = vpop.xlane.xlu0 %1580 }
 0x7c5   : > { %v1585_v21 = vmul.f32 0.03125, %v1581_v26 }
 0x7c7   : > { %v1587_v22 = vadd.f32 1e-12, %v1585_v21 }
 0x7c8   : > { %v1584_v27 = vpop.xlane.xlu0 %1583 }
 0x7c9   : > { %2585 = vrsqrt.f32 %v1587_v22  ;;  %v1586_v28 = vmul.f32 0.03125, %v1584_v27 }
 0x7cb   : > { %v1588_v29 = vadd.f32 1e-12, %v1586_v28 }
 0x7cd   : > { %2587 = vrsqrt.f32 %v1588_v29 }
 0x7d3   : > { %v2586_v30 = vpop.eup %2585 }
 0x7d4   : > { %v1591_v31 = vmul.f32 %v2586_v30, %v1575_v16 }
 0x7d6   : > { %v1599_v34 = vmul.f32 %v2308_v32, %v1591_v31 }
 0x7d7   : > { %v2588_v33 = vpop.eup %2587 }
 0x7d8   : > { %v1592_v35 = vmul.f32 %v2588_v33, %v1576_v18  ;;  %v1607_v38 = vadd.f32 %v2309_v36, %v1599_v34 }
 0x7da   : > { %v1600_v37 = vmul.f32 %v2308_v32, %v1592_v35  ;;  %v2320_v35 = vld [vmem:[%s876_s1] ss:$0 sm:$0xff] }
 0x7dc   : > { %v1608_v39 = vadd.f32 %v2309_v36, %v1600_v37 }
 0x7de   : > { %v1609_v40 = vpack.c.bf16 %v1608_v39, %v1607_v38 }
 0x7e0   : > { %2445 = vmatmul.mubr.msk.bf16.vlgmr.msra.gmra.mrb[20].mxu0 %vm974_vm1, %v1609_v40  ;;  %v2321_v40 = vld [vmem:[%s879_s14] ss:$0 sm:$0xff] }
 0x8b3   : > { %v1670_v46 = vpop.f32.mrb[20].mxu0 }
 0x8b4   : > { %v1671_v47 = vadd.f32 %v2310_v45, %v1670_v46  ;;  %v2446_v48 = vpop.f32.mrb[21].mxu0 }
 0x8b5   : > { %v1673_v49 = vpop.f32.mrb[22].mxu0  ;;  %v2768_v48 = vmov (!%p2322_p1), 0.0  }
 0x8b6   : > { %v1679_v50 = vmul.f32 0.044715, %v1671_v47  ;;  %v1674_v51 = vadd.f32 %v2310_v45, %v1673_v49  ;;  %v2447_v52 = vpop.f32.mrb[23].mxu0  ;;  %v1677_v0 = vmul.f32 0.5, %v1671_v47  ;;  %v2597_v45 = vld [vmem:[%s3379_s22] sm:$0xff] (!%p2322_p1)   ;;  %2460 = vmatprep.subr.bf16.mxu0 (!%p2322_p1), %v2768_v48  ;;  %2468 = vmatprep.subr.bf16.mxu1 (!%p2322_p1), %v2768_v48  ;;  %v2598_v49 = vld [vmem:[%s3379_s22 + $0x8] sm:$0xff] (!%p2322_p1)  }
 0x8b7   : > { %2461 = vmatpush3.bf16.msra.mxu0 (!%p2322_p1), %v2597_v45  ;;  %2464 = vmatprep.mubr.msk.bf16.mxu0 (!%p2322_p1), %vm2769_vm6, %v2768_v48 }
 0x8b8   : > { %v1681_v53 = vmul.f32 %v1679_v50, %v1671_v47  ;;  %v1680_v54 = vmul.f32 0.044715, %v1674_v51  ;;  %v1678_v1 = vmul.f32 0.5, %v1674_v51  ;;  %2462 = vmatprep.subr.bf16.mxu0 (!%p2322_p1), %v2768_v48 }
 0x8ba   : > { %v1683_v55 = vmul.f32 %v1681_v53, %v1671_v47  ;;  %v1682_v56 = vmul.f32 %v1680_v54, %v1674_v51 }
 0x8bb   : > { %2463 = vmatpush3.bf16.msra.mxu0 (!%p2322_p1), %v2598_v49 }
 0x8bc   : > { %v1685_v57 = vadd.f32 %v1683_v55, %v1671_v47  ;;  %v1684_v58 = vmul.f32 %v1682_v56, %v1674_v51  ;;  %v2599_v55 = vld [vmem:[%s3380_s16] sm:$0xff] (!%p2322_p1)   ;;  %v2600_v56 = vld [vmem:[%s3380_s16 + $0x8] sm:$0xff] (!%p2322_p1)  }
 0x8be   : > { %v1687_v59 = vmul.f32 0.7978846, %v1685_v57  ;;  %v1686_v60 = vadd.f32 %v1684_v58, %v1674_v51  ;;  %v2323_v57 = vld [vmem:[%s3381_s20] ss:$0 sm:$0xff] (!%p2322_p1) }
 0x8c0   : > { %2589 = vtanh.f32 %v1687_v59  ;;  %v1688_v3 = vmul.f32 0.7978846, %v1686_v60 }
 0x8c2   : > { %2591 = vtanh.f32 %v1688_v3 }
 0x8ca   : > { %v2590_v61 = vpop.eup %2589 }
 0x8cb   : > { %v1691_v62 = vadd.f32 1.0, %v2590_v61 }
 0x8cc   : > { %v2592_v63 = vpop.eup %2591 }
 0x8cd   : > { %v1692_v2 = vadd.f32 1.0, %v2592_v63  ;;  %v1693_v4 = vmul.f32 %v1691_v62, %v1677_v0  ;;  %v2327_v0 = vld [vmem:[#allocation4] ss:$0 sm:$0xff] (!%p2322_p1) }
 0x8cf   : > { %v1694_v6 = vmul.f32 %v1692_v2, %v1678_v1 }
 0x8d1   : > { %v1695_v7 = vpack.c.bf16 %v1694_v6, %v1693_v4 }
 0x8d3   : > { %2457 = vmatmul.mubr.msk.bf16.vlgmr.msra.gmra.mrb[20].mxu1 %vm1735_vm5, %v1695_v7 }
 0x8d4   : > { %2472 = vmatprep.mubr.msk.bf16.mxu1 (!%p2322_p1), %vm2769_vm6, %v2768_v48  ;;  %2469 = vmatpush3.bf16.msra.mxu1 (!%p2322_p1), %v2599_v55 }
 0x8d5   : > { %2470 = vmatprep.subr.bf16.mxu1 (!%p2322_p1), %v2768_v48 }
 0x8d8   : > { %2471 = vmatpush3.bf16.msra.mxu1 (!%p2322_p1), %v2600_v56 }
 0x9a6   : > { %v1773_v9 = vpop.f32.mrb[20].mxu1 }
 0x9a7   : > { %v1774_v10 = vadd.f32 %v2314_v8, %v1773_v9  ;;  %v2458_v11 = vpop.f32.mrb[21].mxu1 }
 0x9a8   : > { %v1776_v12 = vpop.f32.mrb[22].mxu1 }
 0x9a9   : > { %v1777_v13 = vadd.f32 %v2314_v8, %v1776_v12  ;;  %v2459_v14 = vpop.f32.mrb[23].mxu1  ;;  %v1780_v15 = vadd.f32 %v1774_v10, %v1607_v38 }
 0x9ab   : > { %v1784_v16 = vsel %vm974_vm1, %v1780_v15, 0.0  ;;  %v1781_v17 = vadd.f32 %v1777_v13, %v1608_v39 }
 0x9ac   : > { %1785 = vadd.xlane.f32.xlu1 %v1784_v16 }
 0x9ad   : > { %v1787_v18 = vsel %vm974_vm1, %v1781_v17, 0.0 }
 0x9ae   : > { %1788 = vadd.xlane.f32.xlu0 %v1787_v18 }
 0xa39   : > { %v1786_v5 = vpop.xlane.xlu1 %1785 }
 0xa3a   : > { %v1790_v19 = vmul.f32 0.03125, %v1786_v5 }
 0xa3b   : > { %v1789_v20 = vpop.xlane.xlu0 %1788 }
 0xa3c   : > { %v1792_v23 = vsub.f32 %v1780_v15, %v1790_v19  ;;  %v1791_v24 = vmul.f32 0.03125, %v1789_v20  ;;  %v1978_v19 = vld [vmem:[%s3383_s18] sm:$0x3] (!%p2322_p1) }
 0xa3e   : > { %v1793_v25 = vsub.f32 %v1781_v17, %v1791_v24  ;;  %v1794_v26 = vmul.f32 %v1792_v23, %v1792_v23 }
 0xa40   : > { %v1796_v21 = vsel %vm974_vm1, %v1794_v26, 0.0  ;;  %v1795_v22 = vmul.f32 %v1793_v25, %v1793_v25 }
 0xa41   : > { %1797 = vadd.xlane.f32.xlu1 %v1796_v21 }
 0xa42   : > { %v1799_v27 = vsel %vm974_vm1, %v1795_v22, 0.0  ;;  %v1991_v22 = vsub.f32 (!%p2322_p1), 1.0, %v1978_v19 }
 0xa43   : > { %1800 = vadd.xlane.f32.xlu0 %v1799_v27 }
 0xace   : > { %v1798_v28 = vpop.xlane.xlu1 %1797 }
 0xacf   : > { %v1802_v29 = vmul.f32 0.03125, %v1798_v28 }
 0xad0   : > { %v1801_v30 = vpop.xlane.xlu0 %1800 }
 0xad1   : > { %v1804_v31 = vadd.f32 1e-12, %v1802_v29  ;;  %v1803_v32 = vmul.f32 0.03125, %v1801_v30 }
 0xad3   : > { %2593 = vrsqrt.f32 %v1804_v31  ;;  %v1805_v33 = vadd.f32 1e-12, %v1803_v32 }
 0xad5   : > { %2595 = vrsqrt.f32 %v1805_v33 }
 0xadd   : > { %v2594_v34 = vpop.eup %2593 }
 0xade   : > { %v1808_v36 = vmul.f32 %v2594_v34, %v1792_v23 }
 0xadf   : > { %v2596_v37 = vpop.eup %2595 }
 0xae0   : > { %v1816_v38 = vmul.f32 %v2320_v35, %v1808_v36  ;;  %v1809_v39 = vmul.f32 %v2596_v37, %v1793_v25  ;;  %v1979_v25 = vmul.f32 (!%p2322_p1), 4.793745, %v1978_v19 }
 0xae2   : > { %v1817_v41 = vmul.f32 %v2320_v35, %v1809_v39  ;;  %v1824_v42 = vadd.f32 %v2321_v40, %v1816_v38  ;;  %1831 = sbr.rel (%p2322_p1) target bundleno = 3281 (0xcd1), region = 146 }
 0xae4   : > { %v1825_v43 = vadd.f32 %v2321_v40, %v1817_v41  ;;  %v1832_v46 = vpack.c.bf16 (!%p2322_p1), %v1824_v42, %v1824_v42 }
 0xae6   : > { %v1826_v44 = vpack.c.bf16 %v1825_v43, %v1824_v42  ;;  %v1833_v47 = vpack.c.bf16 (!%p2322_p1), %v1825_v43, %v1825_v43  ;;  %v1847_v50 = vunpack.c.l.b16 (!%p2322_p1), %v1832_v46 }
 0xae8   : > { %1827 = vst.msk [vmem:[#allocation2] sm:$0xff] %vm974_vm1, %v1826_v44  ;;  %v1848_v51 = vunpack.c.l.b16 (!%p2322_p1), %v1833_v47 }
 0xaea   : > { %v1849_v52 = vrot.slane %v1848_v51, 7 }
 0xaec   : > { %v1851_v53 = vsel %vm1850_vm7, %v1849_v52, %v1847_v50 }
 0xaed   : > { %v1852_v54 = vpack.c.b16 %v1851_v53, %v1851_v53 }
 0xaef   : > { %2465 = vmatmul.mubr.msk.bf16.vlgmr.msra.gmra.mrb[0].mxu0 %vm974_vm1, %v1852_v54 }
 0xbc2   : > { %v1902_v58 = vpop.f32.mrb[0].mxu0 }
 0xbc3   : > { %v1903_v59 = vadd.f32 %v2323_v57, %v1902_v58  ;;  %v2466_v60 = vpop.f32.mrb[1].mxu0 }
 0xbc4   : > { %v1905_v3 = vpop.f32.mrb[2].mxu0 }
 0xbc5   : > { %2601 = vtanh.f32 %v1903_v59  ;;  %v2467_v61 = vpop.f32.mrb[3].mxu0 }
 0xbcf   : > { %v2602_v62 = vpop.eup %2601 }
 0xbd0   : > { %v1909_v63 = vpack.c.bf16 %v2602_v62, %v2602_v62 }
 0xbd2   : > { %2473 = vmatmul.mubr.msk.bf16.vlgmr.msra.gmra.mrb[0].mxu1 %vm974_vm1, %v1909_v63 }
 0xca5   : > { %v1970_v1 = vpop.f32.mrb[0].mxu1 }
 0xca6   : > { %v1971_v2 = vadd.f32 %v2327_v0, %v1970_v1  ;;  %v2474_v4 = vpop.f32.mrb[1].mxu1 }
 0xca7   : > { %v1973_v6 = vpop.f32.mrb[2].mxu1 }
 0xca8   : > { %1977 = vst.msk [vmem:[%s3382_s2] sm:$0x3] %vm1976_vm8, %v1971_v2  ;;  %v1980_v7 = vsub.f32 0.0, %v1971_v2  ;;  %v1993_v8 = vand.u32 2147483647, %v1971_v2  ;;  %v2475_v9 = vpop.f32.mrb[3].mxu1 }
 0xca9   : > { %v1992_v20 = vmax.f32 %v1971_v2, 0.0 }
 0xcaa   : > { %v1982_v10 = vand.u32 2147483647, %v1980_v7  ;;  %v1994_v11 = vsub.f32 0.0, %v1993_v8  ;;  %v1981_v26 = vmax.f32 %v1980_v7, 0.0 }
 0xcac   : > { %v1983_v12 = vsub.f32 0.0, %v1982_v10  ;;  %v1995_v13 = vmul.f32 1.442695, %v1994_v11 }
 0xcae   : > { %v1984_v14 = vmul.f32 1.442695, %v1983_v12  ;;  %2603 = vpow2.f32 %v1995_v13 }
 0xcb0   : > { %2605 = vpow2.f32 %v1984_v14 }
 0xcb8   : > { %v2604_v15 = vpop.eup %2603 }
 0xcb9   : > { %v1997_v16 = vadd.f32 1.0, %v2604_v15 }
 0xcba   : > { %v2606_v17 = vpop.eup %2605 }
 0xcbb   : > { %v1986_v18 = vadd.f32 1.0, %v2606_v17  ;;  %2607 = vlog2.f32 %v1997_v16 }
 0xcbd   : > { %2609 = vlog2.f32 %v1986_v18 }
 0xcc5   : > { %v2608_v5 = vpop.eup %2607 }
 0xcc6   : > { %v1999_v23 = vmul.f32 0.6931472, %v2608_v5 }
 0xcc7   : > { %v2610_v24 = vpop.eup %2609 }
 0xcc8   : > { %v1988_v21 = vmul.f32 0.6931472, %v2610_v24  ;;  %v2000_v27 = vadd.f32 %v1999_v23, %v1992_v20 }
 0xcca   : > { %v1989_v28 = vadd.f32 %v1988_v21, %v1981_v26  ;;  %v2001_v30 = vmul.f32 %v2000_v27, %v1991_v22 }
 0xccc   : > { %v1990_v29 = vmul.f32 %v1989_v28, %v1979_v25 }
 0xcce   : > { %v2002_v31 = vadd.f32 %v2001_v30, %v1990_v29 }
 0xcd0   : > { %2003 = vst.msk [vmem:[%s3384_s28] sm:$0x3] %vm1976_vm8, %v2002_v31 }
 0xcd1 PF: > { %s39_s26 = sadd.s32 1, %s2757_s26   ;;  %s3385_s1 = sld [smem:[#allocation14_spill]] }
 0xcd2   : > { %p36_p4 = scmp.ge.s32.totalorder %s39_s26, 4   ;;  %s3386_s2 = sld [smem:[#allocation17_spill]] }
 0xcd3   : > { %s3387_s25 = sld [smem:[#allocation15_spill]]  ;;  %s3388_s3 = sld [smem:[#allocation16_spill]] }
 0xcd4   : > { %s3389_s23 = smov %s2741_s24  ;;  %38 = sbr.rel (!%p36_p4) target bundleno = 20 (0x14), region = 252 }
 0xcd7   : > { %s3390_s24 = smov %s3385_s1 }
 0xcdb   :  { %2037 = vsyncpa [#allocation6], 1 }
 0xcdc   :  { %2039 = vsyncpa [#allocation6 + $0x1], 1 }
 0xcdd   :  { %2040 = vsyncpa [#allocation8], 1 }
 0xcde   :  { %2042 = vsyncpa [#allocation8 + $0x1], 1 }
 0xcdf   :  { %2043 = vsyncmov [#allocation3] }
 0xce2   :  { %s2044_s15 = vpop.sfrf %2043 }
 0xce3   :  { %p2335_p7 = scmp.ne.s32.totalorder %s2044_s15, 0 }
 0xce5   :  { %2048 = shalt.err (%p2335_p7)  }

</bundles_post_ra>
